<compile_context>
chip_gen: v7x
topology: tpu7x:2x2x1
jax: 0.10.0
libtpu: 0.0.40
codegen_flags: <defaults>
</compile_context>

<pallas_src>
import functools

import jax
import jax.numpy as jnp
from jax import lax
from jax.experimental import pallas as pl
from jax.experimental.pallas import tpu as pltpu

BETA = 0.9
THRESHOLD = 1.0


def _snn_kernel(x_ref, w1_ref, b1_ref, w2_ref, b2_ref,
                spk_out_ref, mem_out_ref, *, num_steps, beta, threshold):
    B = x_ref.shape[0]
    H = w1_ref.shape[1]
    N_out = w2_ref.shape[1]

    # --- fc1 (time-invariant) computed ONCE: cur1 = x @ W1 + b1 (MXU) ---
    cur1 = jnp.dot(x_ref[...], w1_ref[...],
                   preferred_element_type=jnp.float32) + b1_ref[...]

    # Load the small fc2 weights once; reused every step.
    w2 = w2_ref[...]
    b2 = b2_ref[...]

    def step(t, carry):
        mem1, mem2 = carry

        # --- lif1 (Leaky, subtract-reset), fused reset via where ---
        d1 = beta * mem1 + cur1
        mem1_new = jnp.where(mem1 > threshold, d1 - threshold, d1)
        spk1 = jnp.where(mem1_new > threshold, 1.0, 0.0).astype(jnp.float32)

        # --- fc2: cur2 = spk1 @ W2 + b2 (MXU) ---
        cur2 = jnp.dot(spk1, w2, preferred_element_type=jnp.float32) + b2

        # --- lif2 (Leaky, subtract-reset) ---
        d2 = beta * mem2 + cur2
        mem2_new = jnp.where(mem2 > threshold, d2 - threshold, d2)
        spk2 = jnp.where(mem2_new > threshold, 1.0, 0.0).astype(jnp.float32)

        # Record this step (VMEM-resident output block; single HBM writeback
        # happens once at kernel end).
        spk_out_ref[t] = spk2
        mem_out_ref[t] = mem2_new

        return (mem1_new, mem2_new)

    mem1_0 = jnp.zeros((B, H), jnp.float32)        # lif1.init_leaky()
    mem2_0 = jnp.zeros((B, N_out), jnp.float32)    # lif2.init_leaky()
    lax.fori_loop(0, num_steps, step, (mem1_0, mem2_0), unroll=True)


def snn_forward(x, w1, b1, w2, b2, *, num_steps, beta=BETA, threshold=THRESHOLD):
    """x: [B, D_in]; w1: [D_in, H]; b1: [H]; w2: [H, N_out]; b2: [N_out]."""
    B, D_in = x.shape
    H = w1.shape[1]
    N_out = w2.shape[1]

    b1_2d = b1.reshape(1, H)
    b2_2d = b2.reshape(1, N_out)

    kernel = functools.partial(_snn_kernel, num_steps=num_steps,
                               beta=beta, threshold=threshold)

    vmem = pltpu.MemorySpace.VMEM
    return pl.pallas_call(
        kernel,
        out_shape=(
            jax.ShapeDtypeStruct((num_steps, B, N_out), jnp.float32),
            jax.ShapeDtypeStruct((num_steps, B, N_out), jnp.float32),
        ),
        # Single invocation (no grid): everything resident in VMEM, whole-array
        # blocks (shapes are tiny relative to the VMEM budget).
        in_specs=[
            pl.BlockSpec(memory_space=vmem),  # x
            pl.BlockSpec(memory_space=vmem),  # w1
            pl.BlockSpec(memory_space=vmem),  # b1
            pl.BlockSpec(memory_space=vmem),  # w2
            pl.BlockSpec(memory_space=vmem),  # b2
        ],
        out_specs=(
            pl.BlockSpec(memory_space=vmem),  # spk2_rec
            pl.BlockSpec(memory_space=vmem),  # mem2_rec
        ),
    )(x, w1, b1_2d, w2, b2_2d)


def snn_forward_ref(x, w1, b1, w2, b2, *, num_steps, beta=BETA, threshold=THRESHOLD):
    """Pure-JAX reference matching the PyTorch/snntorch forward."""
    B = x.shape[0]
    H = w1.shape[1]
    N_out = w2.shape[1]
    mem1 = jnp.zeros((B, H), jnp.float32)
    mem2 = jnp.zeros((B, N_out), jnp.float32)
    spk_rec, mem_rec = [], []
    for _ in range(num_steps):
        cur1 = x @ w1 + b1
        reset1 = (mem1 > threshold).astype(jnp.float32)
        mem1 = beta * mem1 + cur1 - reset1 * threshold
        spk1 = (mem1 > threshold).astype(jnp.float32)
        cur2 = spk1 @ w2 + b2
        reset2 = (mem2 > threshold).astype(jnp.float32)
        mem2 = beta * mem2 + cur2 - reset2 * threshold
        spk2 = (mem2 > threshold).astype(jnp.float32)
        spk_rec.append(spk2)
        mem_rec.append(mem2)
    return jnp.stack(spk_rec, 0), jnp.stack(mem_rec, 0)


if __name__ == "__main__":
    # Small shapes consistent with the module (Linear(D_in, H) -> Leaky ->
    # Linear(H, N_out) -> Leaky, unrolled over num_steps).
    B, D_IN, H, N_OUT = 8, 128, 64, 10
    NUM_STEPS = 15

    key = jax.random.PRNGKey(0)
    kx, kw1, kb1, kw2, kb2 = jax.random.split(key, 5)

    x = jax.random.normal(kx, (B, D_IN), jnp.float32)

    # Deterministic parameter init, PyTorch-Linear-style uniform(-1/sqrt(fan_in), ...).
    bound1 = 1.0 / (D_IN ** 0.5)
    w1 = jax.random.uniform(kw1, (D_IN, H), jnp.float32, -bound1, bound1)
    b1 = jax.random.uniform(kb1, (H,), jnp.float32, -bound1, bound1)
    bound2 = 1.0 / (H ** 0.5)
    w2 = jax.random.uniform(kw2, (H, N_OUT), jnp.float32, -bound2, bound2)
    b2 = jax.random.uniform(kb2, (N_OUT,), jnp.float32, -bound2, bound2)

    spk2_rec, mem2_rec = snn_forward(x, w1, b1, w2, b2, num_steps=NUM_STEPS)
    jax.block_until_ready((spk2_rec, mem2_rec))

    # Cross-check against the pure-JAX reference.
    spk_ref, mem_ref = snn_forward_ref(x, w1, b1, w2, b2, num_steps=NUM_STEPS)
    assert spk2_rec.shape == (NUM_STEPS, B, N_OUT)
    assert mem2_rec.shape == (NUM_STEPS, B, N_OUT)
    assert jnp.allclose(spk2_rec, spk_ref, atol=1e-5)
    assert jnp.allclose(mem2_rec, mem_ref, atol=1e-5)

    print("KERNEL_OK")
</pallas_src>

<mosaic_0001>
module attributes {stable_mosaic.version = 11 : i64} {
  func.func @_snn_kernel(%arg0: memref<8x128xf32, #tpu.memory_space<vmem>>, %arg1: memref<128x64xf32, #tpu.memory_space<vmem>>, %arg2: memref<1x64xf32, #tpu.memory_space<vmem>>, %arg3: memref<64x10xf32, #tpu.memory_space<vmem>>, %arg4: memref<1x10xf32, #tpu.memory_space<vmem>>, %arg5: memref<15x8x10xf32, #tpu.memory_space<vmem>>, %arg6: memref<15x8x10xf32, #tpu.memory_space<vmem>>) attributes {dimension_semantics = [], scalar_prefetch = 0 : i64, scratch_operands = 0 : i64, tpu.core_type = #tpu.core_type<tc>} {
    %c0 = arith.constant 0 : index
    %c0_0 = arith.constant 0 : index
    %0 = vector.load %arg0[%c0, %c0_0] : memref<8x128xf32, #tpu.memory_space<vmem>>, vector<8x128xf32>
    %c0_1 = arith.constant 0 : index
    %c0_2 = arith.constant 0 : index
    %1 = vector.load %arg1[%c0_1, %c0_2] : memref<128x64xf32, #tpu.memory_space<vmem>>, vector<128x64xf32>
    %cst = arith.constant dense<0.000000e+00> : vector<8x64xf32>
    %2 = tpu.matmul %0, %1, %cst {dimension_numbers = #tpu.dot_dimension_numbers<[1], [0], [0], [1], [0, 0, 1, 1], [], []>} : vector<8x128xf32>, vector<128x64xf32>, vector<8x64xf32> -> vector<8x64xf32>
    %c0_3 = arith.constant 0 : index
    %c0_4 = arith.constant 0 : index
    %3 = vector.load %arg2[%c0_3, %c0_4] : memref<1x64xf32, #tpu.memory_space<vmem>>, vector<1x64xf32>
    %4 = vector.broadcast %3 : vector<1x64xf32> to vector<8x64xf32>
    %5 = arith.addf %2, %4 : vector<8x64xf32>
    %c0_5 = arith.constant 0 : index
    %c0_6 = arith.constant 0 : index
    %6 = vector.load %arg3[%c0_5, %c0_6] : memref<64x10xf32, #tpu.memory_space<vmem>>, vector<64x10xf32>
    %c0_7 = arith.constant 0 : index
    %c0_8 = arith.constant 0 : index
    %7 = vector.load %arg4[%c0_7, %c0_8] : memref<1x10xf32, #tpu.memory_space<vmem>>, vector<1x10xf32>
    %cst_9 = arith.constant 0.000000e+00 : f32
    %8 = vector.broadcast %cst_9 : f32 to vector<8x64xf32>
    %cst_10 = arith.constant 0.000000e+00 : f32
    %9 = vector.broadcast %cst_10 : f32 to vector<8x10xf32>
    %c0_i32 = arith.constant 0 : i32
    %cst_11 = arith.constant 0.899999976 : f32
    %10 = vector.broadcast %cst_11 : f32 to vector<8x64xf32>
    %11 = arith.mulf %10, %8 : vector<8x64xf32>
    %12 = arith.addf %11, %5 : vector<8x64xf32>
    %cst_12 = arith.constant 1.000000e+00 : f32
    %13 = vector.broadcast %cst_12 : f32 to vector<8x64xf32>
    %14 = arith.cmpf ogt, %8, %13 : vector<8x64xf32>
    %cst_13 = arith.constant 1.000000e+00 : f32
    %15 = vector.broadcast %cst_13 : f32 to vector<8x64xf32>
    %16 = arith.subf %12, %15 : vector<8x64xf32>
    %17 = arith.select %14, %16, %12 : vector<8x64xi1>, vector<8x64xf32>
    %cst_14 = arith.constant 1.000000e+00 : f32
    %18 = vector.broadcast %cst_14 : f32 to vector<8x64xf32>
    %19 = arith.cmpf ogt, %17, %18 : vector<8x64xf32>
    %cst_15 = arith.constant 1.000000e+00 : f32
    %cst_16 = arith.constant 0.000000e+00 : f32
    %20 = vector.broadcast %cst_15 : f32 to vector<8x64xf32>
    %21 = vector.broadcast %cst_16 : f32 to vector<8x64xf32>
    %22 = arith.select %19, %20, %21 : vector<8x64xi1>, vector<8x64xf32>
    %cst_17 = arith.constant dense<0.000000e+00> : vector<8x10xf32>
    %23 = tpu.matmul %22, %6, %cst_17 {dimension_numbers = #tpu.dot_dimension_numbers<[1], [0], [0], [1], [0, 0, 1, 1], [], []>} : vector<8x64xf32>, vector<64x10xf32>, vector<8x10xf32> -> vector<8x10xf32>
    %24 = vector.broadcast %7 : vector<1x10xf32> to vector<8x10xf32>
    %25 = arith.addf %23, %24 : vector<8x10xf32>
    %cst_18 = arith.constant 0.899999976 : f32
    %26 = vector.broadcast %cst_18 : f32 to vector<8x10xf32>
    %27 = arith.mulf %26, %9 : vector<8x10xf32>
    %28 = arith.addf %27, %25 : vector<8x10xf32>
    %cst_19 = arith.constant 1.000000e+00 : f32
    %29 = vector.broadcast %cst_19 : f32 to vector<8x10xf32>
    %30 = arith.cmpf ogt, %9, %29 : vector<8x10xf32>
    %cst_20 = arith.constant 1.000000e+00 : f32
    %31 = vector.broadcast %cst_20 : f32 to vector<8x10xf32>
    %32 = arith.subf %28, %31 : vector<8x10xf32>
    %33 = arith.select %30, %32, %28 : vector<8x10xi1>, vector<8x10xf32>
    %cst_21 = arith.constant 1.000000e+00 : f32
    %34 = vector.broadcast %cst_21 : f32 to vector<8x10xf32>
    %35 = arith.cmpf ogt, %33, %34 : vector<8x10xf32>
    %cst_22 = arith.constant 1.000000e+00 : f32
    %cst_23 = arith.constant 0.000000e+00 : f32
    %36 = vector.broadcast %cst_22 : f32 to vector<8x10xf32>
    %37 = vector.broadcast %cst_23 : f32 to vector<8x10xf32>
    %38 = arith.select %35, %36, %37 : vector<8x10xi1>, vector<8x10xf32>
    %39 = arith.index_cast %c0_i32 : i32 to index
    %c0_24 = arith.constant 0 : index
    %c0_25 = arith.constant 0 : index
    %40 = vector.load %arg5[%39, %c0_24, %c0_25] : memref<15x8x10xf32, #tpu.memory_space<vmem>>, vector<1x8x10xf32>
    %41 = vector.shape_cast %40 : vector<1x8x10xf32> to vector<8x10xf32>
    %42 = vector.shape_cast %38 : vector<8x10xf32> to vector<1x8x10xf32>
    tpu.vector_store %arg5[%39, %c0_24, %c0_25], %42 {strides = array<i32>} : memref<15x8x10xf32, #tpu.memory_space<vmem>>, vector<1x8x10xf32>,
    %43 = arith.index_cast %c0_i32 : i32 to index
    %c0_26 = arith.constant 0 : index
    %c0_27 = arith.constant 0 : index
    %44 = vector.load %arg6[%43, %c0_26, %c0_27] : memref<15x8x10xf32, #tpu.memory_space<vmem>>, vector<1x8x10xf32>
    %45 = vector.shape_cast %44 : vector<1x8x10xf32> to vector<8x10xf32>
    %46 = vector.shape_cast %33 : vector<8x10xf32> to vector<1x8x10xf32>
    tpu.vector_store %arg6[%43, %c0_26, %c0_27], %46 {strides = array<i32>} : memref<15x8x10xf32, #tpu.memory_space<vmem>>, vector<1x8x10xf32>,
    %c1_i32 = arith.constant 1 : i32
    %cst_28 = arith.constant 0.899999976 : f32
    %47 = vector.broadcast %cst_28 : f32 to vector<8x64xf32>
    %48 = arith.mulf %47, %17 : vector<8x64xf32>
    %49 = arith.addf %48, %5 : vector<8x64xf32>
    %cst_29 = arith.constant 1.000000e+00 : f32
    %50 = vector.broadcast %cst_29 : f32 to vector<8x64xf32>
    %51 = arith.cmpf ogt, %17, %50 : vector<8x64xf32>
    %cst_30 = arith.constant 1.000000e+00 : f32
    %52 = vector.broadcast %cst_30 : f32 to vector<8x64xf32>
    %53 = arith.subf %49, %52 : vector<8x64xf32>
    %54 = arith.select %51, %53, %49 : vector<8x64xi1>, vector<8x64xf32>
    %cst_31 = arith.constant 1.000000e+00 : f32
    %55 = vector.broadcast %cst_31 : f32 to vector<8x64xf32>
    %56 = arith.cmpf ogt, %54, %55 : vector<8x64xf32>
    %cst_32 = arith.constant 1.000000e+00 : f32
    %cst_33 = arith.constant 0.000000e+00 : f32
    %57 = vector.broadcast %cst_32 : f32 to vector<8x64xf32>
    %58 = vector.broadcast %cst_33 : f32 to vector<8x64xf32>
    %59 = arith.select %56, %57, %58 : vector<8x64xi1>, vector<8x64xf32>
    %cst_34 = arith.constant dense<0.000000e+00> : vector<8x10xf32>
    %60 = tpu.matmul %59, %6, %cst_34 {dimension_numbers = #tpu.dot_dimension_numbers<[1], [0], [0], [1], [0, 0, 1, 1], [], []>} : vector<8x64xf32>, vector<64x10xf32>, vector<8x10xf32> -> vector<8x10xf32>
    %61 = vector.broadcast %7 : vector<1x10xf32> to vector<8x10xf32>
    %62 = arith.addf %60, %61 : vector<8x10xf32>
    %cst_35 = arith.constant 0.899999976 : f32
    %63 = vector.broadcast %cst_35 : f32 to vector<8x10xf32>
    %64 = arith.mulf %63, %33 : vector<8x10xf32>
    %65 = arith.addf %64, %62 : vector<8x10xf32>
    %cst_36 = arith.constant 1.000000e+00 : f32
    %66 = vector.broadcast %cst_36 : f32 to vector<8x10xf32>
    %67 = arith.cmpf ogt, %33, %66 : vector<8x10xf32>
    %cst_37 = arith.constant 1.000000e+00 : f32
    %68 = vector.broadcast %cst_37 : f32 to vector<8x10xf32>
    %69 = arith.subf %65, %68 : vector<8x10xf32>
    %70 = arith.select %67, %69, %65 : vector<8x10xi1>, vector<8x10xf32>
    %cst_38 = arith.constant 1.000000e+00 : f32
    %71 = vector.broadcast %cst_38 : f32 to vector<8x10xf32>
    %72 = arith.cmpf ogt, %70, %71 : vector<8x10xf32>
    %cst_39 = arith.constant 1.000000e+00 : f32
    %cst_40 = arith.constant 0.000000e+00 : f32
    %73 = vector.broadcast %cst_39 : f32 to vector<8x10xf32>
    %74 = vector.broadcast %cst_40 : f32 to vector<8x10xf32>
    %75 = arith.select %72, %73, %74 : vector<8x10xi1>, vector<8x10xf32>
    %76 = arith.index_cast %c1_i32 : i32 to index
    %c0_41 = arith.constant 0 : index
    %c0_42 = arith.constant 0 : index
    %77 = vector.load %arg5[%76, %c0_41, %c0_42] : memref<15x8x10xf32, #tpu.memory_space<vmem>>, vector<1x8x10xf32>
    %78 = vector.shape_cast %77 : vector<1x8x10xf32> to vector<8x10xf32>
    %79 = vector.shape_cast %75 : vector<8x10xf32> to vector<1x8x10xf32>
    tpu.vector_store %arg5[%76, %c0_41, %c0_42], %79 {strides = array<i32>} : memref<15x8x10xf32, #tpu.memory_space<vmem>>, vector<1x8x10xf32>,
    %80 = arith.index_cast %c1_i32 : i32 to index
    %c0_43 = arith.constant 0 : index
    %c0_44 = arith.constant 0 : index
    %81 = vector.load %arg6[%80, %c0_43, %c0_44] : memref<15x8x10xf32, #tpu.memory_space<vmem>>, vector<1x8x10xf32>
    %82 = vector.shape_cast %81 : vector<1x8x10xf32> to vector<8x10xf32>
    %83 = vector.shape_cast %70 : vector<8x10xf32> to vector<1x8x10xf32>
    tpu.vector_store %arg6[%80, %c0_43, %c0_44], %83 {strides = array<i32>} : memref<15x8x10xf32, #tpu.memory_space<vmem>>, vector<1x8x10xf32>,
    %c2_i32 = arith.constant 2 : i32
    %cst_45 = arith.constant 0.899999976 : f32
    %84 = vector.broadcast %cst_45 : f32 to vector<8x64xf32>
    %85 = arith.mulf %84, %54 : vector<8x64xf32>
    %86 = arith.addf %85, %5 : vector<8x64xf32>
    %cst_46 = arith.constant 1.000000e+00 : f32
    %87 = vector.broadcast %cst_46 : f32 to vector<8x64xf32>
    %88 = arith.cmpf ogt, %54, %87 : vector<8x64xf32>
    %cst_47 = arith.constant 1.000000e+00 : f32
    %89 = vector.broadcast %cst_47 : f32 to vector<8x64xf32>
    %90 = arith.subf %86, %89 : vector<8x64xf32>
    %91 = arith.select %88, %90, %86 : vector<8x64xi1>, vector<8x64xf32>
    %cst_48 = arith.constant 1.000000e+00 : f32
    %92 = vector.broadcast %cst_48 : f32 to vector<8x64xf32>
    %93 = arith.cmpf ogt, %91, %92 : vector<8x64xf32>
    %cst_49 = arith.constant 1.000000e+00 : f32
    %cst_50 = arith.constant 0.000000e+00 : f32
    %94 = vector.broadcast %cst_49 : f32 to vector<8x64xf32>
    %95 = vector.broadcast %cst_50 : f32 to vector<8x64xf32>
    %96 = arith.select %93, %94, %95 : vector<8x64xi1>, vector<8x64xf32>
    %cst_51 = arith.constant dense<0.000000e+00> : vector<8x10xf32>
    %97 = tpu.matmul %96, %6, %cst_51 {dimension_numbers = #tpu.dot_dimension_numbers<[1], [0], [0], [1], [0, 0, 1, 1], [], []>} : vector<8x64xf32>, vector<64x10xf32>, vector<8x10xf32> -> vector<8x10xf32>
    %98 = vector.broadcast %7 : vector<1x10xf32> to vector<8x10xf32>
    %99 = arith.addf %97, %98 : vector<8x10xf32>
    %cst_52 = arith.constant 0.899999976 : f32
    %100 = vector.broadcast %cst_52 : f32 to vector<8x10xf32>
    %101 = arith.mulf %100, %70 : vector<8x10xf32>
    %102 = arith.addf %101, %99 : vector<8x10xf32>
    %cst_53 = arith.constant 1.000000e+00 : f32
    %103 = vector.broadcast %cst_53 : f32 to vector<8x10xf32>
    %104 = arith.cmpf ogt, %70, %103 : vector<8x10xf32>
    %cst_54 = arith.constant 1.000000e+00 : f32
    %105 = vector.broadcast %cst_54 : f32 to vector<8x10xf32>
    %106 = arith.subf %102, %105 : vector<8x10xf32>
    %107 = arith.select %104, %106, %102 : vector<8x10xi1>, vector<8x10xf32>
    %cst_55 = arith.constant 1.000000e+00 : f32
    %108 = vector.broadcast %cst_55 : f32 to vector<8x10xf32>
    %109 = arith.cmpf ogt, %107, %108 : vector<8x10xf32>
    %cst_56 = arith.constant 1.000000e+00 : f32
    %cst_57 = arith.constant 0.000000e+00 : f32
    %110 = vector.broadcast %cst_56 : f32 to vector<8x10xf32>
    %111 = vector.broadcast %cst_57 : f32 to vector<8x10xf32>
    %112 = arith.select %109, %110, %111 : vector<8x10xi1>, vector<8x10xf32>
    %113 = arith.index_cast %c2_i32 : i32 to index
    %c0_58 = arith.constant 0 : index
    %c0_59 = arith.constant 0 : index
    %114 = vector.load %arg5[%113, %c0_58, %c0_59] : memref<15x8x10xf32, #tpu.memory_space<vmem>>, vector<1x8x10xf32>
    %115 = vector.shape_cast %114 : vector<1x8x10xf32> to vector<8x10xf32>
    %116 = vector.shape_cast %112 : vector<8x10xf32> to vector<1x8x10xf32>
    tpu.vector_store %arg5[%113, %c0_58, %c0_59], %116 {strides = array<i32>} : memref<15x8x10xf32, #tpu.memory_space<vmem>>, vector<1x8x10xf32>,
    %117 = arith.index_cast %c2_i32 : i32 to index
    %c0_60 = arith.constant 0 : index
    %c0_61 = arith.constant 0 : index
    %118 = vector.load %arg6[%117, %c0_60, %c0_61] : memref<15x8x10xf32, #tpu.memory_space<vmem>>, vector<1x8x10xf32>
    %119 = vector.shape_cast %118 : vector<1x8x10xf32> to vector<8x10xf32>
    %120 = vector.shape_cast %107 : vector<8x10xf32> to vector<1x8x10xf32>
    tpu.vector_store %arg6[%117, %c0_60, %c0_61], %120 {strides = array<i32>} : memref<15x8x10xf32, #tpu.memory_space<vmem>>, vector<1x8x10xf32>,
    %c3_i32 = arith.constant 3 : i32
    %cst_62 = arith.constant 0.899999976 : f32
    %121 = vector.broadcast %cst_62 : f32 to vector<8x64xf32>
    %122 = arith.mulf %121, %91 : vector<8x64xf32>
    %123 = arith.addf %122, %5 : vector<8x64xf32>
    %cst_63 = arith.constant 1.000000e+00 : f32
    %124 = vector.broadcast %cst_63 : f32 to vector<8x64xf32>
    %125 = arith.cmpf ogt, %91, %124 : vector<8x64xf32>
    %cst_64 = arith.constant 1.000000e+00 : f32
    %126 = vector.broadcast %cst_64 : f32 to vector<8x64xf32>
    %127 = arith.subf %123, %126 : vector<8x64xf32>
    %128 = arith.select %125, %127, %123 : vector<8x64xi1>, vector<8x64xf32>
    %cst_65 = arith.constant 1.000000e+00 : f32
    %129 = vector.broadcast %cst_65 : f32 to vector<8x64xf32>
    %130 = arith.cmpf ogt, %128, %129 : vector<8x64xf32>
    %cst_66 = arith.constant 1.000000e+00 : f32
    %cst_67 = arith.constant 0.000000e+00 : f32
    %131 = vector.broadcast %cst_66 : f32 to vector<8x64xf32>
    %132 = vector.broadcast %cst_67 : f32 to vector<8x64xf32>
    %133 = arith.select %130, %131, %132 : vector<8x64xi1>, vector<8x64xf32>
    %cst_68 = arith.constant dense<0.000000e+00> : vector<8x10xf32>
    %134 = tpu.matmul %133, %6, %cst_68 {dimension_numbers = #tpu.dot_dimension_numbers<[1], [0], [0], [1], [0, 0, 1, 1], [], []>} : vector<8x64xf32>, vector<64x10xf32>, vector<8x10xf32> -> vector<8x10xf32>
    %135 = vector.broadcast %7 : vector<1x10xf32> to vector<8x10xf32>
    %136 = arith.addf %134, %135 : vector<8x10xf32>
    %cst_69 = arith.constant 0.899999976 : f32
    %137 = vector.broadcast %cst_69 : f32 to vector<8x10xf32>
    %138 = arith.mulf %137, %107 : vector<8x10xf32>
    %139 = arith.addf %138, %136 : vector<8x10xf32>
    %cst_70 = arith.constant 1.000000e+00 : f32
    %140 = vector.broadcast %cst_70 : f32 to vector<8x10xf32>
    %141 = arith.cmpf ogt, %107, %140 : vector<8x10xf32>
    %cst_71 = arith.constant 1.000000e+00 : f32
    %142 = vector.broadcast %cst_71 : f32 to vector<8x10xf32>
    %143 = arith.subf %139, %142 : vector<8x10xf32>
    %144 = arith.select %141, %143, %139 : vector<8x10xi1>, vector<8x10xf32>
    %cst_72 = arith.constant 1.000000e+00 : f32
    %145 = vector.broadcast %cst_72 : f32 to vector<8x10xf32>
    %146 = arith.cmpf ogt, %144, %145 : vector<8x10xf32>
    %cst_73 = arith.constant 1.000000e+00 : f32
    %cst_74 = arith.constant 0.000000e+00 : f32
    %147 = vector.broadcast %cst_73 : f32 to vector<8x10xf32>
    %148 = vector.broadcast %cst_74 : f32 to vector<8x10xf32>
    %149 = arith.select %146, %147, %148 : vector<8x10xi1>, vector<8x10xf32>
    %150 = arith.index_cast %c3_i32 : i32 to index
    %c0_75 = arith.constant 0 : index
    %c0_76 = arith.constant 0 : index
    %151 = vector.load %arg5[%150, %c0_75, %c0_76] : memref<15x8x10xf32, #tpu.memory_space<vmem>>, vector<1x8x10xf32>
    %152 = vector.shape_cast %151 : vector<1x8x10xf32> to vector<8x10xf32>
    %153 = vector.shape_cast %149 : vector<8x10xf32> to vector<1x8x10xf32>
    tpu.vector_store %arg5[%150, %c0_75, %c0_76], %153 {strides = array<i32>} : memref<15x8x10xf32, #tpu.memory_space<vmem>>, vector<1x8x10xf32>,
    %154 = arith.index_cast %c3_i32 : i32 to index
    %c0_77 = arith.constant 0 : index
    %c0_78 = arith.constant 0 : index
    %155 = vector.load %arg6[%154, %c0_77, %c0_78] : memref<15x8x10xf32, #tpu.memory_space<vmem>>, vector<1x8x10xf32>
    %156 = vector.shape_cast %155 : vector<1x8x10xf32> to vector<8x10xf32>
    %157 = vector.shape_cast %144 : vector<8x10xf32> to vector<1x8x10xf32>
    tpu.vector_store %arg6[%154, %c0_77, %c0_78], %157 {strides = array<i32>} : memref<15x8x10xf32, #tpu.memory_space<vmem>>, vector<1x8x10xf32>,
    %c4_i32 = arith.constant 4 : i32
    %cst_79 = arith.constant 0.899999976 : f32
    %158 = vector.broadcast %cst_79 : f32 to vector<8x64xf32>
    %159 = arith.mulf %158, %128 : vector<8x64xf32>
    %160 = arith.addf %159, %5 : vector<8x64xf32>
    %cst_80 = arith.constant 1.000000e+00 : f32
    %161 = vector.broadcast %cst_80 : f32 to vector<8x64xf32>
    %162 = arith.cmpf ogt, %128, %161 : vector<8x64xf32>
    %cst_81 = arith.constant 1.000000e+00 : f32
    %163 = vector.broadcast %cst_81 : f32 to vector<8x64xf32>
    %164 = arith.subf %160, %163 : vector<8x64xf32>
    %165 = arith.select %162, %164, %160 : vector<8x64xi1>, vector<8x64xf32>
    %cst_82 = arith.constant 1.000000e+00 : f32
    %166 = vector.broadcast %cst_82 : f32 to vector<8x64xf32>
    %167 = arith.cmpf ogt, %165, %166 : vector<8x64xf32>
    %cst_83 = arith.constant 1.000000e+00 : f32
    %cst_84 = arith.constant 0.000000e+00 : f32
    %168 = vector.broadcast %cst_83 : f32 to vector<8x64xf32>
    %169 = vector.broadcast %cst_84 : f32 to vector<8x64xf32>
    %170 = arith.select %167, %168, %169 : vector<8x64xi1>, vector<8x64xf32>
    %cst_85 = arith.constant dense<0.000000e+00> : vector<8x10xf32>
    %171 = tpu.matmul %170, %6, %cst_85 {dimension_numbers = #tpu.dot_dimension_numbers<[1], [0], [0], [1], [0, 0, 1, 1], [], []>} : vector<8x64xf32>, vector<64x10xf32>, vector<8x10xf32> -> vector<8x10xf32>
    %172 = vector.broadcast %7 : vector<1x10xf32> to vector<8x10xf32>
    %173 = arith.addf %171, %172 : vector<8x10xf32>
    %cst_86 = arith.constant 0.899999976 : f32
    %174 = vector.broadcast %cst_86 : f32 to vector<8x10xf32>
    %175 = arith.mulf %174, %144 : vector<8x10xf32>
    %176 = arith.addf %175, %173 : vector<8x10xf32>
    %cst_87 = arith.constant 1.000000e+00 : f32
    %177 = vector.broadcast %cst_87 : f32 to vector<8x10xf32>
    %178 = arith.cmpf ogt, %144, %177 : vector<8x10xf32>
    %cst_88 = arith.constant 1.000000e+00 : f32
    %179 = vector.broadcast %cst_88 : f32 to vector<8x10xf32>
    %180 = arith.subf %176, %179 : vector<8x10xf32>
    %181 = arith.select %178, %180, %176 : vector<8x10xi1>, vector<8x10xf32>
    %cst_89 = arith.constant 1.000000e+00 : f32
    %182 = vector.broadcast %cst_89 : f32 to vector<8x10xf32>
    %183 = arith.cmpf ogt, %181, %182 : vector<8x10xf32>
    %cst_90 = arith.constant 1.000000e+00 : f32
    %cst_91 = arith.constant 0.000000e+00 : f32
    %184 = vector.broadcast %cst_90 : f32 to vector<8x10xf32>
    %185 = vector.broadcast %cst_91 : f32 to vector<8x10xf32>
    %186 = arith.select %183, %184, %185 : vector<8x10xi1>, vector<8x10xf32>
    %187 = arith.index_cast %c4_i32 : i32 to index
    %c0_92 = arith.constant 0 : index
    %c0_93 = arith.constant 0 : index
    %188 = vector.load %arg5[%187, %c0_92, %c0_93] : memref<15x8x10xf32, #tpu.memory_space<vmem>>, vector<1x8x10xf32>
    %189 = vector.shape_cast %188 : vector<1x8x10xf32> to vector<8x10xf32>
    %190 = vector.shape_cast %186 : vector<8x10xf32> to vector<1x8x10xf32>
    tpu.vector_store %arg5[%187, %c0_92, %c0_93], %190 {strides = array<i32>} : memref<15x8x10xf32, #tpu.memory_space<vmem>>, vector<1x8x10xf32>,
    %191 = arith.index_cast %c4_i32 : i32 to index
    %c0_94 = arith.constant 0 : index
    %c0_95 = arith.constant 0 : index
    %192 = vector.load %arg6[%191, %c0_94, %c0_95] : memref<15x8x10xf32, #tpu.memory_space<vmem>>, vector<1x8x10xf32>
    %193 = vector.shape_cast %192 : vector<1x8x10xf32> to vector<8x10xf32>
    %194 = vector.shape_cast %181 : vector<8x10xf32> to vector<1x8x10xf32>
    tpu.vector_store %arg6[%191, %c0_94, %c0_95], %194 {strides = array<i32>} : memref<15x8x10xf32, #tpu.memory_space<vmem>>, vector<1x8x10xf32>,
    %c5_i32 = arith.constant 5 : i32
    %cst_96 = arith.constant 0.899999976 : f32
    %195 = vector.broadcast %cst_96 : f32 to vector<8x64xf32>
    %196 = arith.mulf %195, %165 : vector<8x64xf32>
    %197 = arith.addf %196, %5 : vector<8x64xf32>
    %cst_97 = arith.constant 1.000000e+00 : f32
    %198 = vector.broadcast %cst_97 : f32 to vector<8x64xf32>
    %199 = arith.cmpf ogt, %165, %198 : vector<8x64xf32>
    %cst_98 = arith.constant 1.000000e+00 : f32
    %200 = vector.broadcast %cst_98 : f32 to vector<8x64xf32>
    %201 = arith.subf %197, %200 : vector<8x64xf32>
    %202 = arith.select %199, %201, %197 : vector<8x64xi1>, vector<8x64xf32>
    %cst_99 = arith.constant 1.000000e+00 : f32
    %203 = vector.broadcast %cst_99 : f32 to vector<8x64xf32>
    %204 = arith.cmpf ogt, %202, %203 : vector<8x64xf32>
    %cst_100 = arith.constant 1.000000e+00 : f32
    %cst_101 = arith.constant 0.000000e+00 : f32
    %205 = vector.broadcast %cst_100 : f32 to vector<8x64xf32>
    %206 = vector.broadcast %cst_101 : f32 to vector<8x64xf32>
    %207 = arith.select %204, %205, %206 : vector<8x64xi1>, vector<8x64xf32>
    %cst_102 = arith.constant dense<0.000000e+00> : vector<8x10xf32>
    %208 = tpu.matmul %207, %6, %cst_102 {dimension_numbers = #tpu.dot_dimension_numbers<[1], [0], [0], [1], [0, 0, 1, 1], [], []>} : vector<8x64xf32>, vector<64x10xf32>, vector<8x10xf32> -> vector<8x10xf32>
    %209 = vector.broadcast %7 : vector<1x10xf32> to vector<8x10xf32>
    %210 = arith.addf %208, %209 : vector<8x10xf32>
    %cst_103 = arith.constant 0.899999976 : f32
    %211 = vector.broadcast %cst_103 : f32 to vector<8x10xf32>
    %212 = arith.mulf %211, %181 : vector<8x10xf32>
    %213 = arith.addf %212, %210 : vector<8x10xf32>
    %cst_104 = arith.constant 1.000000e+00 : f32
    %214 = vector.broadcast %cst_104 : f32 to vector<8x10xf32>
    %215 = arith.cmpf ogt, %181, %214 : vector<8x10xf32>
    %cst_105 = arith.constant 1.000000e+00 : f32
    %216 = vector.broadcast %cst_105 : f32 to vector<8x10xf32>
    %217 = arith.subf %213, %216 : vector<8x10xf32>
    %218 = arith.select %215, %217, %213 : vector<8x10xi1>, vector<8x10xf32>
    %cst_106 = arith.constant 1.000000e+00 : f32
    %219 = vector.broadcast %cst_106 : f32 to vector<8x10xf32>
    %220 = arith.cmpf ogt, %218, %219 : vector<8x10xf32>
    %cst_107 = arith.constant 1.000000e+00 : f32
    %cst_108 = arith.constant 0.000000e+00 : f32
    %221 = vector.broadcast %cst_107 : f32 to vector<8x10xf32>
    %222 = vector.broadcast %cst_108 : f32 to vector<8x10xf32>
    %223 = arith.select %220, %221, %222 : vector<8x10xi1>, vector<8x10xf32>
    %224 = arith.index_cast %c5_i32 : i32 to index
    %c0_109 = arith.constant 0 : index
    %c0_110 = arith.constant 0 : index
    %225 = vector.load %arg5[%224, %c0_109, %c0_110] : memref<15x8x10xf32, #tpu.memory_space<vmem>>, vector<1x8x10xf32>
    %226 = vector.shape_cast %225 : vector<1x8x10xf32> to vector<8x10xf32>
    %227 = vector.shape_cast %223 : vector<8x10xf32> to vector<1x8x10xf32>
    tpu.vector_store %arg5[%224, %c0_109, %c0_110], %227 {strides = array<i32>} : memref<15x8x10xf32, #tpu.memory_space<vmem>>, vector<1x8x10xf32>,
    %228 = arith.index_cast %c5_i32 : i32 to index
    %c0_111 = arith.constant 0 : index
    %c0_112 = arith.constant 0 : index
    %229 = vector.load %arg6[%228, %c0_111, %c0_112] : memref<15x8x10xf32, #tpu.memory_space<vmem>>, vector<1x8x10xf32>
    %230 = vector.shape_cast %229 : vector<1x8x10xf32> to vector<8x10xf32>
    %231 = vector.shape_cast %218 : vector<8x10xf32> to vector<1x8x10xf32>
    tpu.vector_store %arg6[%228, %c0_111, %c0_112], %231 {strides = array<i32>} : memref<15x8x10xf32, #tpu.memory_space<vmem>>, vector<1x8x10xf32>,
    %c6_i32 = arith.constant 6 : i32
    %cst_113 = arith.constant 0.899999976 : f32
    %232 = vector.broadcast %cst_113 : f32 to vector<8x64xf32>
    %233 = arith.mulf %232, %202 : vector<8x64xf32>
    %234 = arith.addf %233, %5 : vector<8x64xf32>
    %cst_114 = arith.constant 1.000000e+00 : f32
    %235 = vector.broadcast %cst_114 : f32 to vector<8x64xf32>
    %236 = arith.cmpf ogt, %202, %235 : vector<8x64xf32>
    %cst_115 = arith.constant 1.000000e+00 : f32
    %237 = vector.broadcast %cst_115 : f32 to vector<8x64xf32>
    %238 = arith.subf %234, %237 : vector<8x64xf32>
    %239 = arith.select %236, %238, %234 : vector<8x64xi1>, vector<8x64xf32>
    %cst_116 = arith.constant 1.000000e+00 : f32
    %240 = vector.broadcast %cst_116 : f32 to vector<8x64xf32>
    %241 = arith.cmpf ogt, %239, %240 : vector<8x64xf32>
    %cst_117 = arith.constant 1.000000e+00 : f32
    %cst_118 = arith.constant 0.000000e+00 : f32
    %242 = vector.broadcast %cst_117 : f32 to vector<8x64xf32>
    %243 = vector.broadcast %cst_118 : f32 to vector<8x64xf32>
    %244 = arith.select %241, %242, %243 : vector<8x64xi1>, vector<8x64xf32>
    %cst_119 = arith.constant dense<0.000000e+00> : vector<8x10xf32>
    %245 = tpu.matmul %244, %6, %cst_119 {dimension_numbers = #tpu.dot_dimension_numbers<[1], [0], [0], [1], [0, 0, 1, 1], [], []>} : vector<8x64xf32>, vector<64x10xf32>, vector<8x10xf32> -> vector<8x10xf32>
    %246 = vector.broadcast %7 : vector<1x10xf32> to vector<8x10xf32>
    %247 = arith.addf %245, %246 : vector<8x10xf32>
    %cst_120 = arith.constant 0.899999976 : f32
    %248 = vector.broadcast %cst_120 : f32 to vector<8x10xf32>
    %249 = arith.mulf %248, %218 : vector<8x10xf32>
    %250 = arith.addf %249, %247 : vector<8x10xf32>
    %cst_121 = arith.constant 1.000000e+00 : f32
    %251 = vector.broadcast %cst_121 : f32 to vector<8x10xf32>
    %252 = arith.cmpf ogt, %218, %251 : vector<8x10xf32>
    %cst_122 = arith.constant 1.000000e+00 : f32
    %253 = vector.broadcast %cst_122 : f32 to vector<8x10xf32>
    %254 = arith.subf %250, %253 : vector<8x10xf32>
    %255 = arith.select %252, %254, %250 : vector<8x10xi1>, vector<8x10xf32>
    %cst_123 = arith.constant 1.000000e+00 : f32
    %256 = vector.broadcast %cst_123 : f32 to vector<8x10xf32>
    %257 = arith.cmpf ogt, %255, %256 : vector<8x10xf32>
    %cst_124 = arith.constant 1.000000e+00 : f32
    %cst_125 = arith.constant 0.000000e+00 : f32
    %258 = vector.broadcast %cst_124 : f32 to vector<8x10xf32>
    %259 = vector.broadcast %cst_125 : f32 to vector<8x10xf32>
    %260 = arith.select %257, %258, %259 : vector<8x10xi1>, vector<8x10xf32>
    %261 = arith.index_cast %c6_i32 : i32 to index
    %c0_126 = arith.constant 0 : index
    %c0_127 = arith.constant 0 : index
    %262 = vector.load %arg5[%261, %c0_126, %c0_127] : memref<15x8x10xf32, #tpu.memory_space<vmem>>, vector<1x8x10xf32>
    %263 = vector.shape_cast %262 : vector<1x8x10xf32> to vector<8x10xf32>
    %264 = vector.shape_cast %260 : vector<8x10xf32> to vector<1x8x10xf32>
    tpu.vector_store %arg5[%261, %c0_126, %c0_127], %264 {strides = array<i32>} : memref<15x8x10xf32, #tpu.memory_space<vmem>>, vector<1x8x10xf32>,
    %265 = arith.index_cast %c6_i32 : i32 to index
    %c0_128 = arith.constant 0 : index
    %c0_129 = arith.constant 0 : index
    %266 = vector.load %arg6[%265, %c0_128, %c0_129] : memref<15x8x10xf32, #tpu.memory_space<vmem>>, vector<1x8x10xf32>
    %267 = vector.shape_cast %266 : vector<1x8x10xf32> to vector<8x10xf32>
    %268 = vector.shape_cast %255 : vector<8x10xf32> to vector<1x8x10xf32>
    tpu.vector_store %arg6[%265, %c0_128, %c0_129], %268 {strides = array<i32>} : memref<15x8x10xf32, #tpu.memory_space<vmem>>, vector<1x8x10xf32>,
    %c7_i32 = arith.constant 7 : i32
    %cst_130 = arith.constant 0.899999976 : f32
    %269 = vector.broadcast %cst_130 : f32 to vector<8x64xf32>
    %270 = arith.mulf %269, %239 : vector<8x64xf32>
    %271 = arith.addf %270, %5 : vector<8x64xf32>
    %cst_131 = arith.constant 1.000000e+00 : f32
    %272 = vector.broadcast %cst_131 : f32 to vector<8x64xf32>
    %273 = arith.cmpf ogt, %239, %272 : vector<8x64xf32>
    %cst_132 = arith.constant 1.000000e+00 : f32
    %274 = vector.broadcast %cst_132 : f32 to vector<8x64xf32>
    %275 = arith.subf %271, %274 : vector<8x64xf32>
    %276 = arith.select %273, %275, %271 : vector<8x64xi1>, vector<8x64xf32>
    %cst_133 = arith.constant 1.000000e+00 : f32
    %277 = vector.broadcast %cst_133 : f32 to vector<8x64xf32>
    %278 = arith.cmpf ogt, %276, %277 : vector<8x64xf32>
    %cst_134 = arith.constant 1.000000e+00 : f32
    %cst_135 = arith.constant 0.000000e+00 : f32
    %279 = vector.broadcast %cst_134 : f32 to vector<8x64xf32>
    %280 = vector.broadcast %cst_135 : f32 to vector<8x64xf32>
    %281 = arith.select %278, %279, %280 : vector<8x64xi1>, vector<8x64xf32>
    %cst_136 = arith.constant dense<0.000000e+00> : vector<8x10xf32>
    %282 = tpu.matmul %281, %6, %cst_136 {dimension_numbers = #tpu.dot_dimension_numbers<[1], [0], [0], [1], [0, 0, 1, 1], [], []>} : vector<8x64xf32>, vector<64x10xf32>, vector<8x10xf32> -> vector<8x10xf32>
    %283 = vector.broadcast %7 : vector<1x10xf32> to vector<8x10xf32>
    %284 = arith.addf %282, %283 : vector<8x10xf32>
    %cst_137 = arith.constant 0.899999976 : f32
    %285 = vector.broadcast %cst_137 : f32 to vector<8x10xf32>
    %286 = arith.mulf %285, %255 : vector<8x10xf32>
    %287 = arith.addf %286, %284 : vector<8x10xf32>
    %cst_138 = arith.constant 1.000000e+00 : f32
    %288 = vector.broadcast %cst_138 : f32 to vector<8x10xf32>
    %289 = arith.cmpf ogt, %255, %288 : vector<8x10xf32>
    %cst_139 = arith.constant 1.000000e+00 : f32
    %290 = vector.broadcast %cst_139 : f32 to vector<8x10xf32>
    %291 = arith.subf %287, %290 : vector<8x10xf32>
    %292 = arith.select %289, %291, %287 : vector<8x10xi1>, vector<8x10xf32>
    %cst_140 = arith.constant 1.000000e+00 : f32
    %293 = vector.broadcast %cst_140 : f32 to vector<8x10xf32>
    %294 = arith.cmpf ogt, %292, %293 : vector<8x10xf32>
    %cst_141 = arith.constant 1.000000e+00 : f32
    %cst_142 = arith.constant 0.000000e+00 : f32
    %295 = vector.broadcast %cst_141 : f32 to vector<8x10xf32>
    %296 = vector.broadcast %cst_142 : f32 to vector<8x10xf32>
    %297 = arith.select %294, %295, %296 : vector<8x10xi1>, vector<8x10xf32>
    %298 = arith.index_cast %c7_i32 : i32 to index
    %c0_143 = arith.constant 0 : index
    %c0_144 = arith.constant 0 : index
    %299 = vector.load %arg5[%298, %c0_143, %c0_144] : memref<15x8x10xf32, #tpu.memory_space<vmem>>, vector<1x8x10xf32>
    %300 = vector.shape_cast %299 : vector<1x8x10xf32> to vector<8x10xf32>
    %301 = vector.shape_cast %297 : vector<8x10xf32> to vector<1x8x10xf32>
    tpu.vector_store %arg5[%298, %c0_143, %c0_144], %301 {strides = array<i32>} : memref<15x8x10xf32, #tpu.memory_space<vmem>>, vector<1x8x10xf32>,
    %302 = arith.index_cast %c7_i32 : i32 to index
    %c0_145 = arith.constant 0 : index
    %c0_146 = arith.constant 0 : index
    %303 = vector.load %arg6[%302, %c0_145, %c0_146] : memref<15x8x10xf32, #tpu.memory_space<vmem>>, vector<1x8x10xf32>
    %304 = vector.shape_cast %303 : vector<1x8x10xf32> to vector<8x10xf32>
    %305 = vector.shape_cast %292 : vector<8x10xf32> to vector<1x8x10xf32>
    tpu.vector_store %arg6[%302, %c0_145, %c0_146], %305 {strides = array<i32>} : memref<15x8x10xf32, #tpu.memory_space<vmem>>, vector<1x8x10xf32>,
    %c8_i32 = arith.constant 8 : i32
    %cst_147 = arith.constant 0.899999976 : f32
    %306 = vector.broadcast %cst_147 : f32 to vector<8x64xf32>
    %307 = arith.mulf %306, %276 : vector<8x64xf32>
    %308 = arith.addf %307, %5 : vector<8x64xf32>
    %cst_148 = arith.constant 1.000000e+00 : f32
    %309 = vector.broadcast %cst_148 : f32 to vector<8x64xf32>
    %310 = arith.cmpf ogt, %276, %309 : vector<8x64xf32>
    %cst_149 = arith.constant 1.000000e+00 : f32
    %311 = vector.broadcast %cst_149 : f32 to vector<8x64xf32>
    %312 = arith.subf %308, %311 : vector<8x64xf32>
    %313 = arith.select %310, %312, %308 : vector<8x64xi1>, vector<8x64xf32>
    %cst_150 = arith.constant 1.000000e+00 : f32
    %314 = vector.broadcast %cst_150 : f32 to vector<8x64xf32>
    %315 = arith.cmpf ogt, %313, %314 : vector<8x64xf32>
    %cst_151 = arith.constant 1.000000e+00 : f32
    %cst_152 = arith.constant 0.000000e+00 : f32
    %316 = vector.broadcast %cst_151 : f32 to vector<8x64xf32>
    %317 = vector.broadcast %cst_152 : f32 to vector<8x64xf32>
    %318 = arith.select %315, %316, %317 : vector<8x64xi1>, vector<8x64xf32>
    %cst_153 = arith.constant dense<0.000000e+00> : vector<8x10xf32>
    %319 = tpu.matmul %318, %6, %cst_153 {dimension_numbers = #tpu.dot_dimension_numbers<[1], [0], [0], [1], [0, 0, 1, 1], [], []>} : vector<8x64xf32>, vector<64x10xf32>, vector<8x10xf32> -> vector<8x10xf32>
    %320 = vector.broadcast %7 : vector<1x10xf32> to vector<8x10xf32>
    %321 = arith.addf %319, %320 : vector<8x10xf32>
    %cst_154 = arith.constant 0.899999976 : f32
    %322 = vector.broadcast %cst_154 : f32 to vector<8x10xf32>
    %323 = arith.mulf %322, %292 : vector<8x10xf32>
    %324 = arith.addf %323, %321 : vector<8x10xf32>
    %cst_155 = arith.constant 1.000000e+00 : f32
    %325 = vector.broadcast %cst_155 : f32 to vector<8x10xf32>
    %326 = arith.cmpf ogt, %292, %325 : vector<8x10xf32>
    %cst_156 = arith.constant 1.000000e+00 : f32
    %327 = vector.broadcast %cst_156 : f32 to vector<8x10xf32>
    %328 = arith.subf %324, %327 : vector<8x10xf32>
    %329 = arith.select %326, %328, %324 : vector<8x10xi1>, vector<8x10xf32>
    %cst_157 = arith.constant 1.000000e+00 : f32
    %330 = vector.broadcast %cst_157 : f32 to vector<8x10xf32>
    %331 = arith.cmpf ogt, %329, %330 : vector<8x10xf32>
    %cst_158 = arith.constant 1.000000e+00 : f32
    %cst_159 = arith.constant 0.000000e+00 : f32
    %332 = vector.broadcast %cst_158 : f32 to vector<8x10xf32>
    %333 = vector.broadcast %cst_159 : f32 to vector<8x10xf32>
    %334 = arith.select %331, %332, %333 : vector<8x10xi1>, vector<8x10xf32>
    %335 = arith.index_cast %c8_i32 : i32 to index
    %c0_160 = arith.constant 0 : index
    %c0_161 = arith.constant 0 : index
    %336 = vector.load %arg5[%335, %c0_160, %c0_161] : memref<15x8x10xf32, #tpu.memory_space<vmem>>, vector<1x8x10xf32>
    %337 = vector.shape_cast %336 : vector<1x8x10xf32> to vector<8x10xf32>
    %338 = vector.shape_cast %334 : vector<8x10xf32> to vector<1x8x10xf32>
    tpu.vector_store %arg5[%335, %c0_160, %c0_161], %338 {strides = array<i32>} : memref<15x8x10xf32, #tpu.memory_space<vmem>>, vector<1x8x10xf32>,
    %339 = arith.index_cast %c8_i32 : i32 to index
    %c0_162 = arith.constant 0 : index
    %c0_163 = arith.constant 0 : index
    %340 = vector.load %arg6[%339, %c0_162, %c0_163] : memref<15x8x10xf32, #tpu.memory_space<vmem>>, vector<1x8x10xf32>
    %341 = vector.shape_cast %340 : vector<1x8x10xf32> to vector<8x10xf32>
    %342 = vector.shape_cast %329 : vector<8x10xf32> to vector<1x8x10xf32>
    tpu.vector_store %arg6[%339, %c0_162, %c0_163], %342 {strides = array<i32>} : memref<15x8x10xf32, #tpu.memory_space<vmem>>, vector<1x8x10xf32>,
    %c9_i32 = arith.constant 9 : i32
    %cst_164 = arith.constant 0.899999976 : f32
    %343 = vector.broadcast %cst_164 : f32 to vector<8x64xf32>
    %344 = arith.mulf %343, %313 : vector<8x64xf32>
    %345 = arith.addf %344, %5 : vector<8x64xf32>
    %cst_165 = arith.constant 1.000000e+00 : f32
    %346 = vector.broadcast %cst_165 : f32 to vector<8x64xf32>
    %347 = arith.cmpf ogt, %313, %346 : vector<8x64xf32>
    %cst_166 = arith.constant 1.000000e+00 : f32
    %348 = vector.broadcast %cst_166 : f32 to vector<8x64xf32>
    %349 = arith.subf %345, %348 : vector<8x64xf32>
    %350 = arith.select %347, %349, %345 : vector<8x64xi1>, vector<8x64xf32>
    %cst_167 = arith.constant 1.000000e+00 : f32
    %351 = vector.broadcast %cst_167 : f32 to vector<8x64xf32>
    %352 = arith.cmpf ogt, %350, %351 : vector<8x64xf32>
    %cst_168 = arith.constant 1.000000e+00 : f32
    %cst_169 = arith.constant 0.000000e+00 : f32
    %353 = vector.broadcast %cst_168 : f32 to vector<8x64xf32>
    %354 = vector.broadcast %cst_169 : f32 to vector<8x64xf32>
    %355 = arith.select %352, %353, %354 : vector<8x64xi1>, vector<8x64xf32>
    %cst_170 = arith.constant dense<0.000000e+00> : vector<8x10xf32>
    %356 = tpu.matmul %355, %6, %cst_170 {dimension_numbers = #tpu.dot_dimension_numbers<[1], [0], [0], [1], [0, 0, 1, 1], [], []>} : vector<8x64xf32>, vector<64x10xf32>, vector<8x10xf32> -> vector<8x10xf32>
    %357 = vector.broadcast %7 : vector<1x10xf32> to vector<8x10xf32>
    %358 = arith.addf %356, %357 : vector<8x10xf32>
    %cst_171 = arith.constant 0.899999976 : f32
    %359 = vector.broadcast %cst_171 : f32 to vector<8x10xf32>
    %360 = arith.mulf %359, %329 : vector<8x10xf32>
    %361 = arith.addf %360, %358 : vector<8x10xf32>
    %cst_172 = arith.constant 1.000000e+00 : f32
    %362 = vector.broadcast %cst_172 : f32 to vector<8x10xf32>
    %363 = arith.cmpf ogt, %329, %362 : vector<8x10xf32>
    %cst_173 = arith.constant 1.000000e+00 : f32
    %364 = vector.broadcast %cst_173 : f32 to vector<8x10xf32>
    %365 = arith.subf %361, %364 : vector<8x10xf32>
    %366 = arith.select %363, %365, %361 : vector<8x10xi1>, vector<8x10xf32>
    %cst_174 = arith.constant 1.000000e+00 : f32
    %367 = vector.broadcast %cst_174 : f32 to vector<8x10xf32>
    %368 = arith.cmpf ogt, %366, %367 : vector<8x10xf32>
    %cst_175 = arith.constant 1.000000e+00 : f32
    %cst_176 = arith.constant 0.000000e+00 : f32
    %369 = vector.broadcast %cst_175 : f32 to vector<8x10xf32>
    %370 = vector.broadcast %cst_176 : f32 to vector<8x10xf32>
    %371 = arith.select %368, %369, %370 : vector<8x10xi1>, vector<8x10xf32>
    %372 = arith.index_cast %c9_i32 : i32 to index
    %c0_177 = arith.constant 0 : index
    %c0_178 = arith.constant 0 : index
    %373 = vector.load %arg5[%372, %c0_177, %c0_178] : memref<15x8x10xf32, #tpu.memory_space<vmem>>, vector<1x8x10xf32>
    %374 = vector.shape_cast %373 : vector<1x8x10xf32> to vector<8x10xf32>
    %375 = vector.shape_cast %371 : vector<8x10xf32> to vector<1x8x10xf32>
    tpu.vector_store %arg5[%372, %c0_177, %c0_178], %375 {strides = array<i32>} : memref<15x8x10xf32, #tpu.memory_space<vmem>>, vector<1x8x10xf32>,
    %376 = arith.index_cast %c9_i32 : i32 to index
    %c0_179 = arith.constant 0 : index
    %c0_180 = arith.constant 0 : index
    %377 = vector.load %arg6[%376, %c0_179, %c0_180] : memref<15x8x10xf32, #tpu.memory_space<vmem>>, vector<1x8x10xf32>
    %378 = vector.shape_cast %377 : vector<1x8x10xf32> to vector<8x10xf32>
    %379 = vector.shape_cast %366 : vector<8x10xf32> to vector<1x8x10xf32>
    tpu.vector_store %arg6[%376, %c0_179, %c0_180], %379 {strides = array<i32>} : memref<15x8x10xf32, #tpu.memory_space<vmem>>, vector<1x8x10xf32>,
    %c10_i32 = arith.constant 10 : i32
    %cst_181 = arith.constant 0.899999976 : f32
    %380 = vector.broadcast %cst_181 : f32 to vector<8x64xf32>
    %381 = arith.mulf %380, %350 : vector<8x64xf32>
    %382 = arith.addf %381, %5 : vector<8x64xf32>
    %cst_182 = arith.constant 1.000000e+00 : f32
    %383 = vector.broadcast %cst_182 : f32 to vector<8x64xf32>
    %384 = arith.cmpf ogt, %350, %383 : vector<8x64xf32>
    %cst_183 = arith.constant 1.000000e+00 : f32
    %385 = vector.broadcast %cst_183 : f32 to vector<8x64xf32>
    %386 = arith.subf %382, %385 : vector<8x64xf32>
    %387 = arith.select %384, %386, %382 : vector<8x64xi1>, vector<8x64xf32>
    %cst_184 = arith.constant 1.000000e+00 : f32
    %388 = vector.broadcast %cst_184 : f32 to vector<8x64xf32>
    %389 = arith.cmpf ogt, %387, %388 : vector<8x64xf32>
    %cst_185 = arith.constant 1.000000e+00 : f32
    %cst_186 = arith.constant 0.000000e+00 : f32
    %390 = vector.broadcast %cst_185 : f32 to vector<8x64xf32>
    %391 = vector.broadcast %cst_186 : f32 to vector<8x64xf32>
    %392 = arith.select %389, %390, %391 : vector<8x64xi1>, vector<8x64xf32>
    %cst_187 = arith.constant dense<0.000000e+00> : vector<8x10xf32>
    %393 = tpu.matmul %392, %6, %cst_187 {dimension_numbers = #tpu.dot_dimension_numbers<[1], [0], [0], [1], [0, 0, 1, 1], [], []>} : vector<8x64xf32>, vector<64x10xf32>, vector<8x10xf32> -> vector<8x10xf32>
    %394 = vector.broadcast %7 : vector<1x10xf32> to vector<8x10xf32>
    %395 = arith.addf %393, %394 : vector<8x10xf32>
    %cst_188 = arith.constant 0.899999976 : f32
    %396 = vector.broadcast %cst_188 : f32 to vector<8x10xf32>
    %397 = arith.mulf %396, %366 : vector<8x10xf32>
    %398 = arith.addf %397, %395 : vector<8x10xf32>
    %cst_189 = arith.constant 1.000000e+00 : f32
    %399 = vector.broadcast %cst_189 : f32 to vector<8x10xf32>
    %400 = arith.cmpf ogt, %366, %399 : vector<8x10xf32>
    %cst_190 = arith.constant 1.000000e+00 : f32
    %401 = vector.broadcast %cst_190 : f32 to vector<8x10xf32>
    %402 = arith.subf %398, %401 : vector<8x10xf32>
    %403 = arith.select %400, %402, %398 : vector<8x10xi1>, vector<8x10xf32>
    %cst_191 = arith.constant 1.000000e+00 : f32
    %404 = vector.broadcast %cst_191 : f32 to vector<8x10xf32>
    %405 = arith.cmpf ogt, %403, %404 : vector<8x10xf32>
    %cst_192 = arith.constant 1.000000e+00 : f32
    %cst_193 = arith.constant 0.000000e+00 : f32
    %406 = vector.broadcast %cst_192 : f32 to vector<8x10xf32>
    %407 = vector.broadcast %cst_193 : f32 to vector<8x10xf32>
    %408 = arith.select %405, %406, %407 : vector<8x10xi1>, vector<8x10xf32>
    %409 = arith.index_cast %c10_i32 : i32 to index
    %c0_194 = arith.constant 0 : index
    %c0_195 = arith.constant 0 : index
    %410 = vector.load %arg5[%409, %c0_194, %c0_195] : memref<15x8x10xf32, #tpu.memory_space<vmem>>, vector<1x8x10xf32>
    %411 = vector.shape_cast %410 : vector<1x8x10xf32> to vector<8x10xf32>
    %412 = vector.shape_cast %408 : vector<8x10xf32> to vector<1x8x10xf32>
    tpu.vector_store %arg5[%409, %c0_194, %c0_195], %412 {strides = array<i32>} : memref<15x8x10xf32, #tpu.memory_space<vmem>>, vector<1x8x10xf32>,
    %413 = arith.index_cast %c10_i32 : i32 to index
    %c0_196 = arith.constant 0 : index
    %c0_197 = arith.constant 0 : index
    %414 = vector.load %arg6[%413, %c0_196, %c0_197] : memref<15x8x10xf32, #tpu.memory_space<vmem>>, vector<1x8x10xf32>
    %415 = vector.shape_cast %414 : vector<1x8x10xf32> to vector<8x10xf32>
    %416 = vector.shape_cast %403 : vector<8x10xf32> to vector<1x8x10xf32>
    tpu.vector_store %arg6[%413, %c0_196, %c0_197], %416 {strides = array<i32>} : memref<15x8x10xf32, #tpu.memory_space<vmem>>, vector<1x8x10xf32>,
    %c11_i32 = arith.constant 11 : i32
    %cst_198 = arith.constant 0.899999976 : f32
    %417 = vector.broadcast %cst_198 : f32 to vector<8x64xf32>
    %418 = arith.mulf %417, %387 : vector<8x64xf32>
    %419 = arith.addf %418, %5 : vector<8x64xf32>
    %cst_199 = arith.constant 1.000000e+00 : f32
    %420 = vector.broadcast %cst_199 : f32 to vector<8x64xf32>
    %421 = arith.cmpf ogt, %387, %420 : vector<8x64xf32>
    %cst_200 = arith.constant 1.000000e+00 : f32
    %422 = vector.broadcast %cst_200 : f32 to vector<8x64xf32>
    %423 = arith.subf %419, %422 : vector<8x64xf32>
    %424 = arith.select %421, %423, %419 : vector<8x64xi1>, vector<8x64xf32>
    %cst_201 = arith.constant 1.000000e+00 : f32
    %425 = vector.broadcast %cst_201 : f32 to vector<8x64xf32>
    %426 = arith.cmpf ogt, %424, %425 : vector<8x64xf32>
    %cst_202 = arith.constant 1.000000e+00 : f32
    %cst_203 = arith.constant 0.000000e+00 : f32
    %427 = vector.broadcast %cst_202 : f32 to vector<8x64xf32>
    %428 = vector.broadcast %cst_203 : f32 to vector<8x64xf32>
    %429 = arith.select %426, %427, %428 : vector<8x64xi1>, vector<8x64xf32>
    %cst_204 = arith.constant dense<0.000000e+00> : vector<8x10xf32>
    %430 = tpu.matmul %429, %6, %cst_204 {dimension_numbers = #tpu.dot_dimension_numbers<[1], [0], [0], [1], [0, 0, 1, 1], [], []>} : vector<8x64xf32>, vector<64x10xf32>, vector<8x10xf32> -> vector<8x10xf32>
    %431 = vector.broadcast %7 : vector<1x10xf32> to vector<8x10xf32>
    %432 = arith.addf %430, %431 : vector<8x10xf32>
    %cst_205 = arith.constant 0.899999976 : f32
    %433 = vector.broadcast %cst_205 : f32 to vector<8x10xf32>
    %434 = arith.mulf %433, %403 : vector<8x10xf32>
    %435 = arith.addf %434, %432 : vector<8x10xf32>
    %cst_206 = arith.constant 1.000000e+00 : f32
    %436 = vector.broadcast %cst_206 : f32 to vector<8x10xf32>
    %437 = arith.cmpf ogt, %403, %436 : vector<8x10xf32>
    %cst_207 = arith.constant 1.000000e+00 : f32
    %438 = vector.broadcast %cst_207 : f32 to vector<8x10xf32>
    %439 = arith.subf %435, %438 : vector<8x10xf32>
    %440 = arith.select %437, %439, %435 : vector<8x10xi1>, vector<8x10xf32>
    %cst_208 = arith.constant 1.000000e+00 : f32
    %441 = vector.broadcast %cst_208 : f32 to vector<8x10xf32>
    %442 = arith.cmpf ogt, %440, %441 : vector<8x10xf32>
    %cst_209 = arith.constant 1.000000e+00 : f32
    %cst_210 = arith.constant 0.000000e+00 : f32
    %443 = vector.broadcast %cst_209 : f32 to vector<8x10xf32>
    %444 = vector.broadcast %cst_210 : f32 to vector<8x10xf32>
    %445 = arith.select %442, %443, %444 : vector<8x10xi1>, vector<8x10xf32>
    %446 = arith.index_cast %c11_i32 : i32 to index
    %c0_211 = arith.constant 0 : index
    %c0_212 = arith.constant 0 : index
    %447 = vector.load %arg5[%446, %c0_211, %c0_212] : memref<15x8x10xf32, #tpu.memory_space<vmem>>, vector<1x8x10xf32>
    %448 = vector.shape_cast %447 : vector<1x8x10xf32> to vector<8x10xf32>
    %449 = vector.shape_cast %445 : vector<8x10xf32> to vector<1x8x10xf32>
    tpu.vector_store %arg5[%446, %c0_211, %c0_212], %449 {strides = array<i32>} : memref<15x8x10xf32, #tpu.memory_space<vmem>>, vector<1x8x10xf32>,
    %450 = arith.index_cast %c11_i32 : i32 to index
    %c0_213 = arith.constant 0 : index
    %c0_214 = arith.constant 0 : index
    %451 = vector.load %arg6[%450, %c0_213, %c0_214] : memref<15x8x10xf32, #tpu.memory_space<vmem>>, vector<1x8x10xf32>
    %452 = vector.shape_cast %451 : vector<1x8x10xf32> to vector<8x10xf32>
    %453 = vector.shape_cast %440 : vector<8x10xf32> to vector<1x8x10xf32>
    tpu.vector_store %arg6[%450, %c0_213, %c0_214], %453 {strides = array<i32>} : memref<15x8x10xf32, #tpu.memory_space<vmem>>, vector<1x8x10xf32>,
    %c12_i32 = arith.constant 12 : i32
    %cst_215 = arith.constant 0.899999976 : f32
    %454 = vector.broadcast %cst_215 : f32 to vector<8x64xf32>
    %455 = arith.mulf %454, %424 : vector<8x64xf32>
    %456 = arith.addf %455, %5 : vector<8x64xf32>
    %cst_216 = arith.constant 1.000000e+00 : f32
    %457 = vector.broadcast %cst_216 : f32 to vector<8x64xf32>
    %458 = arith.cmpf ogt, %424, %457 : vector<8x64xf32>
    %cst_217 = arith.constant 1.000000e+00 : f32
    %459 = vector.broadcast %cst_217 : f32 to vector<8x64xf32>
    %460 = arith.subf %456, %459 : vector<8x64xf32>
    %461 = arith.select %458, %460, %456 : vector<8x64xi1>, vector<8x64xf32>
    %cst_218 = arith.constant 1.000000e+00 : f32
    %462 = vector.broadcast %cst_218 : f32 to vector<8x64xf32>
    %463 = arith.cmpf ogt, %461, %462 : vector<8x64xf32>
    %cst_219 = arith.constant 1.000000e+00 : f32
    %cst_220 = arith.constant 0.000000e+00 : f32
    %464 = vector.broadcast %cst_219 : f32 to vector<8x64xf32>
    %465 = vector.broadcast %cst_220 : f32 to vector<8x64xf32>
    %466 = arith.select %463, %464, %465 : vector<8x64xi1>, vector<8x64xf32>
    %cst_221 = arith.constant dense<0.000000e+00> : vector<8x10xf32>
    %467 = tpu.matmul %466, %6, %cst_221 {dimension_numbers = #tpu.dot_dimension_numbers<[1], [0], [0], [1], [0, 0, 1, 1], [], []>} : vector<8x64xf32>, vector<64x10xf32>, vector<8x10xf32> -> vector<8x10xf32>
    %468 = vector.broadcast %7 : vector<1x10xf32> to vector<8x10xf32>
    %469 = arith.addf %467, %468 : vector<8x10xf32>
    %cst_222 = arith.constant 0.899999976 : f32
    %470 = vector.broadcast %cst_222 : f32 to vector<8x10xf32>
    %471 = arith.mulf %470, %440 : vector<8x10xf32>
    %472 = arith.addf %471, %469 : vector<8x10xf32>
    %cst_223 = arith.constant 1.000000e+00 : f32
    %473 = vector.broadcast %cst_223 : f32 to vector<8x10xf32>
    %474 = arith.cmpf ogt, %440, %473 : vector<8x10xf32>
    %cst_224 = arith.constant 1.000000e+00 : f32
    %475 = vector.broadcast %cst_224 : f32 to vector<8x10xf32>
    %476 = arith.subf %472, %475 : vector<8x10xf32>
    %477 = arith.select %474, %476, %472 : vector<8x10xi1>, vector<8x10xf32>
    %cst_225 = arith.constant 1.000000e+00 : f32
    %478 = vector.broadcast %cst_225 : f32 to vector<8x10xf32>
    %479 = arith.cmpf ogt, %477, %478 : vector<8x10xf32>
    %cst_226 = arith.constant 1.000000e+00 : f32
    %cst_227 = arith.constant 0.000000e+00 : f32
    %480 = vector.broadcast %cst_226 : f32 to vector<8x10xf32>
    %481 = vector.broadcast %cst_227 : f32 to vector<8x10xf32>
    %482 = arith.select %479, %480, %481 : vector<8x10xi1>, vector<8x10xf32>
    %483 = arith.index_cast %c12_i32 : i32 to index
    %c0_228 = arith.constant 0 : index
    %c0_229 = arith.constant 0 : index
    %484 = vector.load %arg5[%483, %c0_228, %c0_229] : memref<15x8x10xf32, #tpu.memory_space<vmem>>, vector<1x8x10xf32>
    %485 = vector.shape_cast %484 : vector<1x8x10xf32> to vector<8x10xf32>
    %486 = vector.shape_cast %482 : vector<8x10xf32> to vector<1x8x10xf32>
    tpu.vector_store %arg5[%483, %c0_228, %c0_229], %486 {strides = array<i32>} : memref<15x8x10xf32, #tpu.memory_space<vmem>>, vector<1x8x10xf32>,
    %487 = arith.index_cast %c12_i32 : i32 to index
    %c0_230 = arith.constant 0 : index
    %c0_231 = arith.constant 0 : index
    %488 = vector.load %arg6[%487, %c0_230, %c0_231] : memref<15x8x10xf32, #tpu.memory_space<vmem>>, vector<1x8x10xf32>
    %489 = vector.shape_cast %488 : vector<1x8x10xf32> to vector<8x10xf32>
    %490 = vector.shape_cast %477 : vector<8x10xf32> to vector<1x8x10xf32>
    tpu.vector_store %arg6[%487, %c0_230, %c0_231], %490 {strides = array<i32>} : memref<15x8x10xf32, #tpu.memory_space<vmem>>, vector<1x8x10xf32>,
    %c13_i32 = arith.constant 13 : i32
    %cst_232 = arith.constant 0.899999976 : f32
    %491 = vector.broadcast %cst_232 : f32 to vector<8x64xf32>
    %492 = arith.mulf %491, %461 : vector<8x64xf32>
    %493 = arith.addf %492, %5 : vector<8x64xf32>
    %cst_233 = arith.constant 1.000000e+00 : f32
    %494 = vector.broadcast %cst_233 : f32 to vector<8x64xf32>
    %495 = arith.cmpf ogt, %461, %494 : vector<8x64xf32>
    %cst_234 = arith.constant 1.000000e+00 : f32
    %496 = vector.broadcast %cst_234 : f32 to vector<8x64xf32>
    %497 = arith.subf %493, %496 : vector<8x64xf32>
    %498 = arith.select %495, %497, %493 : vector<8x64xi1>, vector<8x64xf32>
    %cst_235 = arith.constant 1.000000e+00 : f32
    %499 = vector.broadcast %cst_235 : f32 to vector<8x64xf32>
    %500 = arith.cmpf ogt, %498, %499 : vector<8x64xf32>
    %cst_236 = arith.constant 1.000000e+00 : f32
    %cst_237 = arith.constant 0.000000e+00 : f32
    %501 = vector.broadcast %cst_236 : f32 to vector<8x64xf32>
    %502 = vector.broadcast %cst_237 : f32 to vector<8x64xf32>
    %503 = arith.select %500, %501, %502 : vector<8x64xi1>, vector<8x64xf32>
    %cst_238 = arith.constant dense<0.000000e+00> : vector<8x10xf32>
    %504 = tpu.matmul %503, %6, %cst_238 {dimension_numbers = #tpu.dot_dimension_numbers<[1], [0], [0], [1], [0, 0, 1, 1], [], []>} : vector<8x64xf32>, vector<64x10xf32>, vector<8x10xf32> -> vector<8x10xf32>
    %505 = vector.broadcast %7 : vector<1x10xf32> to vector<8x10xf32>
    %506 = arith.addf %504, %505 : vector<8x10xf32>
    %cst_239 = arith.constant 0.899999976 : f32
    %507 = vector.broadcast %cst_239 : f32 to vector<8x10xf32>
    %508 = arith.mulf %507, %477 : vector<8x10xf32>
    %509 = arith.addf %508, %506 : vector<8x10xf32>
    %cst_240 = arith.constant 1.000000e+00 : f32
    %510 = vector.broadcast %cst_240 : f32 to vector<8x10xf32>
    %511 = arith.cmpf ogt, %477, %510 : vector<8x10xf32>
    %cst_241 = arith.constant 1.000000e+00 : f32
    %512 = vector.broadcast %cst_241 : f32 to vector<8x10xf32>
    %513 = arith.subf %509, %512 : vector<8x10xf32>
    %514 = arith.select %511, %513, %509 : vector<8x10xi1>, vector<8x10xf32>
    %cst_242 = arith.constant 1.000000e+00 : f32
    %515 = vector.broadcast %cst_242 : f32 to vector<8x10xf32>
    %516 = arith.cmpf ogt, %514, %515 : vector<8x10xf32>
    %cst_243 = arith.constant 1.000000e+00 : f32
    %cst_244 = arith.constant 0.000000e+00 : f32
    %517 = vector.broadcast %cst_243 : f32 to vector<8x10xf32>
    %518 = vector.broadcast %cst_244 : f32 to vector<8x10xf32>
    %519 = arith.select %516, %517, %518 : vector<8x10xi1>, vector<8x10xf32>
    %520 = arith.index_cast %c13_i32 : i32 to index
    %c0_245 = arith.constant 0 : index
    %c0_246 = arith.constant 0 : index
    %521 = vector.load %arg5[%520, %c0_245, %c0_246] : memref<15x8x10xf32, #tpu.memory_space<vmem>>, vector<1x8x10xf32>
    %522 = vector.shape_cast %521 : vector<1x8x10xf32> to vector<8x10xf32>
    %523 = vector.shape_cast %519 : vector<8x10xf32> to vector<1x8x10xf32>
    tpu.vector_store %arg5[%520, %c0_245, %c0_246], %523 {strides = array<i32>} : memref<15x8x10xf32, #tpu.memory_space<vmem>>, vector<1x8x10xf32>,
    %524 = arith.index_cast %c13_i32 : i32 to index
    %c0_247 = arith.constant 0 : index
    %c0_248 = arith.constant 0 : index
    %525 = vector.load %arg6[%524, %c0_247, %c0_248] : memref<15x8x10xf32, #tpu.memory_space<vmem>>, vector<1x8x10xf32>
    %526 = vector.shape_cast %525 : vector<1x8x10xf32> to vector<8x10xf32>
    %527 = vector.shape_cast %514 : vector<8x10xf32> to vector<1x8x10xf32>
    tpu.vector_store %arg6[%524, %c0_247, %c0_248], %527 {strides = array<i32>} : memref<15x8x10xf32, #tpu.memory_space<vmem>>, vector<1x8x10xf32>,
    %c14_i32 = arith.constant 14 : i32
    %cst_249 = arith.constant 0.899999976 : f32
    %528 = vector.broadcast %cst_249 : f32 to vector<8x64xf32>
    %529 = arith.mulf %528, %498 : vector<8x64xf32>
    %530 = arith.addf %529, %5 : vector<8x64xf32>
    %cst_250 = arith.constant 1.000000e+00 : f32
    %531 = vector.broadcast %cst_250 : f32 to vector<8x64xf32>
    %532 = arith.cmpf ogt, %498, %531 : vector<8x64xf32>
    %cst_251 = arith.constant 1.000000e+00 : f32
    %533 = vector.broadcast %cst_251 : f32 to vector<8x64xf32>
    %534 = arith.subf %530, %533 : vector<8x64xf32>
    %535 = arith.select %532, %534, %530 : vector<8x64xi1>, vector<8x64xf32>
    %cst_252 = arith.constant 1.000000e+00 : f32
    %536 = vector.broadcast %cst_252 : f32 to vector<8x64xf32>
    %537 = arith.cmpf ogt, %535, %536 : vector<8x64xf32>
    %cst_253 = arith.constant 1.000000e+00 : f32
    %cst_254 = arith.constant 0.000000e+00 : f32
    %538 = vector.broadcast %cst_253 : f32 to vector<8x64xf32>
    %539 = vector.broadcast %cst_254 : f32 to vector<8x64xf32>
    %540 = arith.select %537, %538, %539 : vector<8x64xi1>, vector<8x64xf32>
    %cst_255 = arith.constant dense<0.000000e+00> : vector<8x10xf32>
    %541 = tpu.matmul %540, %6, %cst_255 {dimension_numbers = #tpu.dot_dimension_numbers<[1], [0], [0], [1], [0, 0, 1, 1], [], []>} : vector<8x64xf32>, vector<64x10xf32>, vector<8x10xf32> -> vector<8x10xf32>
    %542 = vector.broadcast %7 : vector<1x10xf32> to vector<8x10xf32>
    %543 = arith.addf %541, %542 : vector<8x10xf32>
    %cst_256 = arith.constant 0.899999976 : f32
    %544 = vector.broadcast %cst_256 : f32 to vector<8x10xf32>
    %545 = arith.mulf %544, %514 : vector<8x10xf32>
    %546 = arith.addf %545, %543 : vector<8x10xf32>
    %cst_257 = arith.constant 1.000000e+00 : f32
    %547 = vector.broadcast %cst_257 : f32 to vector<8x10xf32>
    %548 = arith.cmpf ogt, %514, %547 : vector<8x10xf32>
    %cst_258 = arith.constant 1.000000e+00 : f32
    %549 = vector.broadcast %cst_258 : f32 to vector<8x10xf32>
    %550 = arith.subf %546, %549 : vector<8x10xf32>
    %551 = arith.select %548, %550, %546 : vector<8x10xi1>, vector<8x10xf32>
    %cst_259 = arith.constant 1.000000e+00 : f32
    %552 = vector.broadcast %cst_259 : f32 to vector<8x10xf32>
    %553 = arith.cmpf ogt, %551, %552 : vector<8x10xf32>
    %cst_260 = arith.constant 1.000000e+00 : f32
    %cst_261 = arith.constant 0.000000e+00 : f32
    %554 = vector.broadcast %cst_260 : f32 to vector<8x10xf32>
    %555 = vector.broadcast %cst_261 : f32 to vector<8x10xf32>
    %556 = arith.select %553, %554, %555 : vector<8x10xi1>, vector<8x10xf32>
    %557 = arith.index_cast %c14_i32 : i32 to index
    %c0_262 = arith.constant 0 : index
    %c0_263 = arith.constant 0 : index
    %558 = vector.load %arg5[%557, %c0_262, %c0_263] : memref<15x8x10xf32, #tpu.memory_space<vmem>>, vector<1x8x10xf32>
    %559 = vector.shape_cast %558 : vector<1x8x10xf32> to vector<8x10xf32>
    %560 = vector.shape_cast %556 : vector<8x10xf32> to vector<1x8x10xf32>
    tpu.vector_store %arg5[%557, %c0_262, %c0_263], %560 {strides = array<i32>} : memref<15x8x10xf32, #tpu.memory_space<vmem>>, vector<1x8x10xf32>,
    %561 = arith.index_cast %c14_i32 : i32 to index
    %c0_264 = arith.constant 0 : index
    %c0_265 = arith.constant 0 : index
    %562 = vector.load %arg6[%561, %c0_264, %c0_265] : memref<15x8x10xf32, #tpu.memory_space<vmem>>, vector<1x8x10xf32>
    %563 = vector.shape_cast %562 : vector<1x8x10xf32> to vector<8x10xf32>
    %564 = vector.shape_cast %551 : vector<8x10xf32> to vector<1x8x10xf32>
    tpu.vector_store %arg6[%561, %c0_264, %c0_265], %564 {strides = array<i32>} : memref<15x8x10xf32, #tpu.memory_space<vmem>>, vector<1x8x10xf32>,
    %c15_i32 = arith.constant 15 : i32
    return
  }
}

</mosaic_0001>

<bundles_post_ra>
// kernel: tpu_custom_call.1
= control target key start
LH: loop header
LB: loop body
LE: loop exit
PB: predicated region body
PF: predicated region fallthrough
CT: control target
= control target key end

     0   :  { %v2227_v0 = vmov 0.0|0.0   ;;  %vm2228_vm0 = vmmov 0   ;;  %v2229_v4 = vmov 0.0   ;;  %vm137_vm1 = vcmask 523264   ;;  %s2722_s1 = inlined_call_operand.vmem [shape: f32[128,64], index: 1, kind: input, shape index: {}]   ;;  %s2723_s3 = inlined_call_operand.vmem [shape: f32[64,10], index: 3, kind: input, shape index: {}]   ;;  %s2724_s0 = inlined_call_operand.vmem [shape: f32[8,128], index: 0, kind: input, shape index: {}]   ;;  %s2725_s2 = inlined_call_operand.vmem [shape: f32[1,64], index: 2, kind: input, shape index: {}]   ;;  %s2726_s4 = inlined_call_operand.vmem [shape: f32[1,10], index: 4, kind: input, shape index: {}]   ;;  %s2727_s6 = inlined_call_operand.vmem [shape: f32[15,8,10], index: 6, kind: output, shape index: {1}]   ;;  %s2728_s5 = inlined_call_operand.vmem [shape: f32[15,8,10], index: 5, kind: output, shape index: {0}]  }
   0x1   :  { %2020 = vmatprep.subr.bf16.mxu0 %v2227_v0  ;;  %v23_v1 = vld [vmem:[%s2722_s1] sm:$0xff]  ;;  %v24_v2 = vld [vmem:[%s2722_s1 + $0x8] sm:$0xff]  ;;  %v25_v3 = vld [vmem:[%s2722_s1 + $0x10] sm:$0xff]  ;;  %1732 = vmatprep.mubr.msk.f32.mxu0 %vm2228_vm0, %v2229_v4 }
   0x2   :  { %v2021_v5 = vpack.c.bf16 %v24_v2, %v23_v1  ;;  %v26_v6 = vld [vmem:[%s2722_s1 + $0x18] sm:$0xff]  ;;  %2044 = vmatprep.subr.bf16.mxu1 %v2227_v0  ;;  %1751 = vmatprep.mubr.msk.f32.mxu1 %vm2228_vm0, %v2229_v4  ;;  %v27_v8 = vld [vmem:[%s2722_s1 + $0x20] sm:$0xff]  ;;  %v28_v9 = vld [vmem:[%s2722_s1 + $0x28] sm:$0xff] }
   0x3   :  { %v2024_v7 = vpack.c.bf16 %v26_v6, %v25_v3  ;;  %v116_v10 = vld [vmem:[%s2723_s3] sm:$0xff]  ;;  %v117_v11 = vld [vmem:[%s2723_s3 + $0x8] sm:$0xff]  ;;  %v118_v12 = vld [vmem:[%s2723_s3 + $0x10] sm:$0xff]  ;;  %v2027_v14 = vpack.c.bf16 %v28_v9, %v27_v8 }
   0x4   :  { %2022 = vmatpush3.bf16.msra.mxu0 %v2021_v5  ;;  %v119_v13 = vld [vmem:[%s2723_s3 + $0x18] sm:$0xff]  ;;  %v2302_v15 = vpack.c.bf16 %v117_v11, %v116_v10  ;;  %v29_v16 = vld [vmem:[%s2722_s1 + $0x30] sm:$0xff]  ;;  %v120_v19 = vld [vmem:[%s2723_s3 + $0x20] sm:$0xff] }
   0x5   :  { %2023 = vmatprep.subr.bf16.mxu0 %v2227_v0  ;;  %v30_v17 = vld [vmem:[%s2722_s1 + $0x38] sm:$0xff]  ;;  %v2312_v18 = vpack.c.bf16 %v119_v13, %v118_v12  ;;  %v121_v20 = vld [vmem:[%s2723_s3 + $0x28] sm:$0xff]  ;;  %v31_v22 = vld [vmem:[%s2722_s1 + $0x40] sm:$0xff] }
   0x6   :  { %2046 = vmatpush3.bf16.msra.mxu1 %v2302_v15  ;;  %v2030_v21 = vpack.c.bf16 %v30_v17, %v29_v16  ;;  %v32_v23 = vld [vmem:[%s2722_s1 + $0x48] sm:$0xff]  ;;  %v2329_v24 = vpack.c.bf16 %v121_v20, %v120_v19  ;;  %v33_v26 = vld [vmem:[%s2722_s1 + $0x50] sm:$0xff]  ;;  %v34_v27 = vld [vmem:[%s2722_s1 + $0x58] sm:$0xff] }
   0x7   :  { %2047 = vmatprep.subr.bf16.mxu1 %v2227_v0  ;;  %v2033_v25 = vpack.c.bf16 %v32_v23, %v31_v22  ;;  %v2036_v28 = vpack.c.bf16 %v34_v27, %v33_v26  ;;  %v35_v29 = vld [vmem:[%s2722_s1 + $0x60] sm:$0xff]  ;;  %v36_v30 = vld [vmem:[%s2722_s1 + $0x68] sm:$0xff]  ;;  %v37_v32 = vld [vmem:[%s2722_s1 + $0x70] sm:$0xff] }
   0x8   :  { %2025 = vmatpush3.bf16.msra.mxu0 %v2024_v7  ;;  %v2039_v31 = vpack.c.bf16 %v36_v30, %v35_v29  ;;  %v38_v33 = vld [vmem:[%s2722_s1 + $0x78] sm:$0xff]  ;;  %v22_v35 = vld [vmem:[%s2724_s0] sm:$0xff]  ;;  %v122_v36 = vld [vmem:[%s2723_s3 + $0x30] sm:$0xff] }
   0x9   :  { %2026 = vmatprep.subr.bf16.mxu0 %v2227_v0  ;;  %v2042_v34 = vpack.c.bf16 %v38_v33, %v37_v32  ;;  %v123_v37 = vld [vmem:[%s2723_s3 + $0x38] sm:$0xff]  ;;  %v1473_v39 = vld [vmem:[%s2725_s2] ss:$0 sm:$0xff] }
   0xa   :  { %2049 = vmatpush3.bf16.msra.mxu1 %v2312_v18  ;;  %v2374_v38 = vpack.c.bf16 %v123_v37, %v122_v36 }
   0xb   :  { %2050 = vmatprep.subr.bf16.mxu1 %v2227_v0 }
   0xc   :  { %2028 = vmatpush3.bf16.msra.mxu0 %v2027_v14 }
   0xd   :  { %2029 = vmatprep.subr.bf16.mxu0 %v2227_v0 }
   0xe   :  { %2052 = vmatpush3.bf16.msra.mxu1 %v2329_v24 }
   0xf   :  { %2053 = vmatprep.subr.bf16.mxu1 %v2227_v0 }
  0x10   :  { %2031 = vmatpush3.bf16.msra.mxu0 %v2030_v21 }
  0x11   :  { %2032 = vmatprep.subr.bf16.mxu0 %v2227_v0 }
  0x12   :  { %2055 = vmatpush3.bf16.msra.mxu1 %v2374_v38 }
  0x13   :  { %2056 = vmatprep.subr.bf16.mxu1 %v2227_v0 }
  0x14   :  { %2034 = vmatpush3.bf16.msra.mxu0 %v2033_v25 }
  0x15   :  { %2035 = vmatprep.subr.bf16.mxu0 %v2227_v0 }
  0x18   :  { %2037 = vmatpush3.bf16.msra.mxu0 %v2036_v28 }
  0x19   :  { %2038 = vmatprep.subr.bf16.mxu0 %v2227_v0 }
  0x1c   :  { %2040 = vmatpush3.bf16.msra.mxu0 %v2039_v31 }
  0x1d   :  { %2041 = vmatprep.subr.bf16.mxu0 %v2227_v0 }
  0x20   :  { %2043 = vmatpush3.bf16.msra.mxu0 %v2042_v34 }
  0x21   :  { %2068 = vmatprep.subr.bf16.mxu0 %v2227_v0 }
  0x23   :  { %1733 = vmatmul.mubr.f32.vlgmr.msra.gmra.mrb[0].mxu0 %v22_v35 }
  0x24   :  { %2070 = vmatpush3.bf16.msra.mxu0 %v2302_v15  ;;  %1789 = vmatprep.mubr.msk.f32.mxu0 %vm2228_vm0, %v2229_v4 }
  0x25   :  { %2071 = vmatprep.subr.bf16.mxu0 %v2227_v0 }
  0x28   :  { %2073 = vmatpush3.bf16.msra.mxu0 %v2312_v18 }
  0x29   :  { %2074 = vmatprep.subr.bf16.mxu0 %v2227_v0 }
  0x2c   :  { %2076 = vmatpush3.bf16.msra.mxu0 %v2329_v24 }
  0x2d   :  { %2077 = vmatprep.subr.bf16.mxu0 %v2227_v0 }
  0x30   :  { %2079 = vmatpush3.bf16.msra.mxu0 %v2374_v38 }
  0x31   :  { %2092 = vmatprep.subr.bf16.mxu0 %v2227_v0 }
  0xf6   :  { %v112_v40 = vpop.f32.mrb[0].mxu0 }
  0xf7   :  { %v2383_v41 = vadd.f32 %v1473_v39, %v112_v40  ;;  %v1734_v42 = vpop.f32.mrb[1].mxu0 }
  0xf9   :  { %vm129_vm2 = vcmp.gt.f32.partialorder %v2383_v41, 1.0  ;;  %v219_v43 = vmul.f32 0.9, %v2383_v41 }
  0xfa   :  { %v130_v44 = vsel %vm129_vm2, 1.0, %v2229_v4 }
  0xfb   :  { %1752 = vmatmul.mubr.msk.f32.vlgmr.msra.gmra.mrb[0].mxu1 %vm137_vm1, %v130_v44  ;;  %v220_v45 = vadd.f32 %v219_v43, %v2383_v41 }
  0xfc   :  { %2058 = vmatpush3.bf16.msra.mxu1 %v2302_v15  ;;  %1770 = vmatprep.mubr.msk.f32.mxu1 %vm2228_vm0, %v2229_v4 }
  0xfd   :  { %v1478_v46 = vadd.f32 -1.0, %v220_v45  ;;  %2059 = vmatprep.subr.bf16.mxu1 %v2227_v0 }
  0xff   :  { %v222_v47 = vsel %vm129_vm2, %v1478_v46, %v220_v45  ;;  %vm216_vm2 = vcmask 80896  }
 0x100   :  { %v308_v48 = vmul.f32 0.9, %v222_v47  ;;  %2061 = vmatpush3.bf16.msra.mxu1 %v2312_v18  ;;  %vm223_vm3 = vcmp.gt.f32.partialorder %v222_v47, 1.0 }
 0x101   :  { %2062 = vmatprep.subr.bf16.mxu1 %v2227_v0  ;;  %v224_v55 = vsel %vm223_vm3, 1.0, %v2229_v4 }
 0x102   :  { %v309_v49 = vadd.f32 %v308_v48, %v2383_v41 }
 0x104   :  { %v1483_v50 = vadd.f32 -1.0, %v309_v49  ;;  %2064 = vmatpush3.bf16.msra.mxu1 %v2329_v24 }
 0x105   :  { %2065 = vmatprep.subr.bf16.mxu1 %v2227_v0 }
 0x106   :  { %v311_v51 = vsel %vm223_vm3, %v1483_v50, %v309_v49 }
 0x107   :  { %vm312_vm4 = vcmp.gt.f32.partialorder %v311_v51, 1.0  ;;  %v397_v52 = vmul.f32 0.9, %v311_v51 }
 0x108   :  { %2067 = vmatpush3.bf16.msra.mxu1 %v2374_v38  ;;  %v313_v53 = vsel %vm312_vm4, 1.0, %v2229_v4 }
 0x109   :  { %1790 = vmatmul.mubr.msk.f32.vlgmr.msra.gmra.mrb[2].mxu0 %vm137_vm1, %v313_v53  ;;  %v398_v54 = vadd.f32 %v397_v52, %v2383_v41  ;;  %2080 = vmatprep.subr.bf16.mxu1 %v2227_v0 }
 0x10a   :  { %2094 = vmatpush3.bf16.msra.mxu0 %v2302_v15  ;;  %1827 = vmatprep.mubr.msk.f32.mxu0 %vm2228_vm0, %v2229_v4 }
 0x10b   :  { %v1488_v56 = vadd.f32 -1.0, %v398_v54  ;;  %1771 = vmatmul.mubr.msk.f32.vlgmr.msra.gmra.mrb[2].mxu1 %vm137_vm1, %v224_v55  ;;  %2095 = vmatprep.subr.bf16.mxu0 %v2227_v0 }
 0x10c   :  { %2082 = vmatpush3.bf16.msra.mxu1 %v2302_v15  ;;  %1808 = vmatprep.mubr.msk.f32.mxu1 %vm2228_vm0, %v2229_v4 }
 0x10d   :  { %v400_v57 = vsel %vm312_vm4, %v1488_v56, %v398_v54  ;;  %2083 = vmatprep.subr.bf16.mxu1 %v2227_v0  ;;  %v2570_v54 = vld [vmem:[%s2726_s4] ss:$0 sm:$0xff] }
 0x10e   :  { %v486_v58 = vmul.f32 0.9, %v400_v57  ;;  %2097 = vmatpush3.bf16.msra.mxu0 %v2312_v18  ;;  %vm401_vm5 = vcmp.gt.f32.partialorder %v400_v57, 1.0 }
 0x10f   :  { %2098 = vmatprep.subr.bf16.mxu0 %v2227_v0  ;;  %v402_v3 = vsel %vm401_vm5, 1.0, %v2229_v4 }
 0x110   :  { %v487_v59 = vadd.f32 %v486_v58, %v2383_v41  ;;  %2085 = vmatpush3.bf16.msra.mxu1 %v2312_v18 }
 0x111   :  { %2086 = vmatprep.subr.bf16.mxu1 %v2227_v0 }
 0x112   :  { %2100 = vmatpush3.bf16.msra.mxu0 %v2329_v24  ;;  %v1493_v60 = vadd.f32 -1.0, %v487_v59 }
 0x113   :  { %2101 = vmatprep.subr.bf16.mxu0 %v2227_v0 }
 0x114   :  { %2088 = vmatpush3.bf16.msra.mxu1 %v2329_v24  ;;  %v489_v61 = vsel %vm401_vm5, %v1493_v60, %v487_v59 }
 0x115   :  { %2089 = vmatprep.subr.bf16.mxu1 %v2227_v0  ;;  %vm490_vm6 = vcmp.gt.f32.partialorder %v489_v61, 1.0  ;;  %v575_v62 = vmul.f32 0.9, %v489_v61 }
 0x116   :  { %2103 = vmatpush3.bf16.msra.mxu0 %v2374_v38  ;;  %v491_v63 = vsel %vm490_vm6, 1.0, %v2229_v4 }
 0x117   :  { %v576_v1 = vadd.f32 %v575_v62, %v2383_v41  ;;  %2116 = vmatprep.subr.bf16.mxu0 %v2227_v0 }
 0x118   :  { %2091 = vmatpush3.bf16.msra.mxu1 %v2374_v38 }
 0x119   :  { %1828 = vmatmul.mubr.msk.f32.vlgmr.msra.gmra.mrb[4].mxu0 %vm137_vm1, %v491_v63  ;;  %v1498_v2 = vadd.f32 -1.0, %v576_v1  ;;  %2104 = vmatprep.subr.bf16.mxu1 %v2227_v0 }
 0x11a   :  { %2118 = vmatpush3.bf16.msra.mxu0 %v2302_v15  ;;  %1865 = vmatprep.mubr.msk.f32.mxu0 %vm2228_vm0, %v2229_v4 }
 0x11b   :  { %v578_v5 = vsel %vm490_vm6, %v1498_v2, %v576_v1  ;;  %1809 = vmatmul.mubr.msk.f32.vlgmr.msra.gmra.mrb[4].mxu1 %vm137_vm1, %v402_v3  ;;  %2119 = vmatprep.subr.bf16.mxu0 %v2227_v0 }
 0x11c   :  { %v664_v6 = vmul.f32 0.9, %v578_v5  ;;  %2106 = vmatpush3.bf16.msra.mxu1 %v2302_v15  ;;  %1846 = vmatprep.mubr.msk.f32.mxu1 %vm2228_vm0, %v2229_v4  ;;  %vm579_vm7 = vcmp.gt.f32.partialorder %v578_v5, 1.0 }
 0x11d   :  { %2107 = vmatprep.subr.bf16.mxu1 %v2227_v0  ;;  %v580_v17 = vsel %vm579_vm7, 1.0, %v2229_v4 }
 0x11e   :  { %v665_v7 = vadd.f32 %v664_v6, %v2383_v41  ;;  %2121 = vmatpush3.bf16.msra.mxu0 %v2312_v18 }
 0x11f   :  { %2122 = vmatprep.subr.bf16.mxu0 %v2227_v0 }
 0x120   :  { %2109 = vmatpush3.bf16.msra.mxu1 %v2312_v18  ;;  %v1503_v8 = vadd.f32 -1.0, %v665_v7 }
 0x121   :  { %2110 = vmatprep.subr.bf16.mxu1 %v2227_v0 }
 0x122   :  { %2124 = vmatpush3.bf16.msra.mxu0 %v2329_v24  ;;  %v667_v9 = vsel %vm579_vm7, %v1503_v8, %v665_v7 }
 0x123   :  { %2125 = vmatprep.subr.bf16.mxu0 %v2227_v0  ;;  %v753_v10 = vmul.f32 0.9, %v667_v9  ;;  %vm668_vm8 = vcmp.gt.f32.partialorder %v667_v9, 1.0 }
 0x124   :  { %2112 = vmatpush3.bf16.msra.mxu1 %v2329_v24  ;;  %v669_v13 = vsel %vm668_vm8, 1.0, %v2229_v4 }
 0x125   :  { %2113 = vmatprep.subr.bf16.mxu1 %v2227_v0  ;;  %v754_v11 = vadd.f32 %v753_v10, %v2383_v41 }
 0x126   :  { %2127 = vmatpush3.bf16.msra.mxu0 %v2374_v38 }
 0x127   :  { %v1508_v12 = vadd.f32 -1.0, %v754_v11  ;;  %2140 = vmatprep.subr.bf16.mxu0 %v2227_v0 }
 0x128   :  { %2115 = vmatpush3.bf16.msra.mxu1 %v2374_v38 }
 0x129   :  { %1866 = vmatmul.mubr.msk.f32.vlgmr.msra.gmra.mrb[6].mxu0 %vm137_vm1, %v669_v13  ;;  %v756_v14 = vsel %vm668_vm8, %v1508_v12, %v754_v11  ;;  %2128 = vmatprep.subr.bf16.mxu1 %v2227_v0 }
 0x12a   :  { %v842_v16 = vmul.f32 0.9, %v756_v14  ;;  %2142 = vmatpush3.bf16.msra.mxu0 %v2302_v15  ;;  %1903 = vmatprep.mubr.msk.f32.mxu0 %vm2228_vm0, %v2229_v4  ;;  %vm757_vm9 = vcmp.gt.f32.partialorder %v756_v14, 1.0 }
 0x12b   :  { %1847 = vmatmul.mubr.msk.f32.vlgmr.msra.gmra.mrb[6].mxu1 %vm137_vm1, %v580_v17  ;;  %2143 = vmatprep.subr.bf16.mxu0 %v2227_v0  ;;  %v758_v30 = vsel %vm757_vm9, 1.0, %v2229_v4 }
 0x12c   :  { %v843_v19 = vadd.f32 %v842_v16, %v2383_v41  ;;  %2130 = vmatpush3.bf16.msra.mxu1 %v2302_v15  ;;  %1884 = vmatprep.mubr.msk.f32.mxu1 %vm2228_vm0, %v2229_v4 }
 0x12d   :  { %2131 = vmatprep.subr.bf16.mxu1 %v2227_v0 }
 0x12e   :  { %2145 = vmatpush3.bf16.msra.mxu0 %v2312_v18  ;;  %v1513_v20 = vadd.f32 -1.0, %v843_v19 }
 0x12f   :  { %2146 = vmatprep.subr.bf16.mxu0 %v2227_v0 }
 0x130   :  { %2133 = vmatpush3.bf16.msra.mxu1 %v2312_v18  ;;  %v845_v21 = vsel %vm757_vm9, %v1513_v20, %v843_v19 }
 0x131   :  { %2134 = vmatprep.subr.bf16.mxu1 %v2227_v0  ;;  %v931_v22 = vmul.f32 0.9, %v845_v21  ;;  %vm846_vm10 = vcmp.gt.f32.partialorder %v845_v21, 1.0 }
 0x132   :  { %2148 = vmatpush3.bf16.msra.mxu0 %v2329_v24  ;;  %v847_v27 = vsel %vm846_vm10, 1.0, %v2229_v4 }
 0x133   :  { %2149 = vmatprep.subr.bf16.mxu0 %v2227_v0  ;;  %v932_v23 = vadd.f32 %v931_v22, %v2383_v41 }
 0x134   :  { %2136 = vmatpush3.bf16.msra.mxu1 %v2329_v24 }
 0x135   :  { %2137 = vmatprep.subr.bf16.mxu1 %v2227_v0  ;;  %v1518_v25 = vadd.f32 -1.0, %v932_v23 }
 0x136   :  { %2151 = vmatpush3.bf16.msra.mxu0 %v2374_v38 }
 0x137   :  { %v934_v26 = vsel %vm846_vm10, %v1518_v25, %v932_v23  ;;  %2164 = vmatprep.subr.bf16.mxu0 %v2227_v0 }
 0x138   :  { %2139 = vmatpush3.bf16.msra.mxu1 %v2374_v38  ;;  %v1020_v28 = vmul.f32 0.9, %v934_v26  ;;  %vm935_vm11 = vcmp.gt.f32.partialorder %v934_v26, 1.0 }
 0x139   :  { %1904 = vmatmul.mubr.msk.f32.vlgmr.msra.gmra.mrb[8].mxu0 %vm137_vm1, %v847_v27  ;;  %2152 = vmatprep.subr.bf16.mxu1 %v2227_v0  ;;  %v936_v42 = vsel %vm935_vm11, 1.0, %v2229_v4 }
 0x13a   :  { %v1021_v29 = vadd.f32 %v1020_v28, %v2383_v41  ;;  %2166 = vmatpush3.bf16.msra.mxu0 %v2302_v15  ;;  %1941 = vmatprep.mubr.msk.f32.mxu0 %vm2228_vm0, %v2229_v4 }
 0x13b   :  { %1885 = vmatmul.mubr.msk.f32.vlgmr.msra.gmra.mrb[8].mxu1 %vm137_vm1, %v758_v30  ;;  %2167 = vmatprep.subr.bf16.mxu0 %v2227_v0 }
 0x13c   :  { %2154 = vmatpush3.bf16.msra.mxu1 %v2302_v15  ;;  %v1523_v31 = vadd.f32 -1.0, %v1021_v29  ;;  %1922 = vmatprep.mubr.msk.f32.mxu1 %vm2228_vm0, %v2229_v4 }
 0x13d   :  { %2155 = vmatprep.subr.bf16.mxu1 %v2227_v0 }
 0x13e   :  { %2169 = vmatpush3.bf16.msra.mxu0 %v2312_v18  ;;  %v1023_v32 = vsel %vm935_vm11, %v1523_v31, %v1021_v29 }
 0x13f   :  { %2170 = vmatprep.subr.bf16.mxu0 %v2227_v0  ;;  %v1109_v33 = vmul.f32 0.9, %v1023_v32  ;;  %vm1024_vm12 = vcmp.gt.f32.partialorder %v1023_v32, 1.0 }
 0x140   :  { %2157 = vmatpush3.bf16.msra.mxu1 %v2312_v18  ;;  %v1025_v39 = vsel %vm1024_vm12, 1.0, %v2229_v4 }
 0x141   :  { %2158 = vmatprep.subr.bf16.mxu1 %v2227_v0  ;;  %v1110_v34 = vadd.f32 %v1109_v33, %v2383_v41 }
 0x142   :  { %2172 = vmatpush3.bf16.msra.mxu0 %v2329_v24 }
 0x143   :  { %2173 = vmatprep.subr.bf16.mxu0 %v2227_v0  ;;  %v1528_v35 = vadd.f32 -1.0, %v1110_v34 }
 0x144   :  { %2160 = vmatpush3.bf16.msra.mxu1 %v2329_v24 }
 0x145   :  { %2161 = vmatprep.subr.bf16.mxu1 %v2227_v0  ;;  %v1112_v36 = vsel %vm1024_vm12, %v1528_v35, %v1110_v34 }
 0x146   :  { %2175 = vmatpush3.bf16.msra.mxu0 %v2374_v38  ;;  %v1198_v37 = vmul.f32 0.9, %v1112_v36  ;;  %vm1113_vm13 = vcmp.gt.f32.partialorder %v1112_v36, 1.0 }
 0x147   :  { %2188 = vmatprep.subr.bf16.mxu0 %v2227_v0  ;;  %v1114_v51 = vsel %vm1113_vm13, 1.0, %v2229_v4 }
 0x148   :  { %2163 = vmatpush3.bf16.msra.mxu1 %v2374_v38  ;;  %v1199_v40 = vadd.f32 %v1198_v37, %v2383_v41 }
 0x149   :  { %1942 = vmatmul.mubr.msk.f32.vlgmr.msra.gmra.mrb[10].mxu0 %vm137_vm1, %v1025_v39  ;;  %2176 = vmatprep.subr.bf16.mxu1 %v2227_v0 }
 0x14a   :  { %2190 = vmatpush3.bf16.msra.mxu0 %v2302_v15  ;;  %1979 = vmatprep.mubr.msk.f32.mxu0 %vm2228_vm0, %v2229_v4  ;;  %v1533_v43 = vadd.f32 -1.0, %v1199_v40 }
 0x14b   :  { %1923 = vmatmul.mubr.msk.f32.vlgmr.msra.gmra.mrb[10].mxu1 %vm137_vm1, %v936_v42  ;;  %2191 = vmatprep.subr.bf16.mxu0 %v2227_v0 }
 0x14c   :  { %2178 = vmatpush3.bf16.msra.mxu1 %v2302_v15  ;;  %v1201_v44 = vsel %vm1113_vm13, %v1533_v43, %v1199_v40  ;;  %1960 = vmatprep.mubr.msk.f32.mxu1 %vm2228_vm0, %v2229_v4 }
 0x14d   :  { %2179 = vmatprep.subr.bf16.mxu1 %v2227_v0  ;;  %v1287_v45 = vmul.f32 0.9, %v1201_v44  ;;  %vm1202_vm14 = vcmp.gt.f32.partialorder %v1201_v44, 1.0 }
 0x14e   :  { %2193 = vmatpush3.bf16.msra.mxu0 %v2312_v18  ;;  %v1203_v50 = vsel %vm1202_vm14, 1.0, %v2229_v4 }
 0x14f   :  { %2194 = vmatprep.subr.bf16.mxu0 %v2227_v0  ;;  %v1288_v46 = vadd.f32 %v1287_v45, %v2383_v41 }
 0x150   :  { %2181 = vmatpush3.bf16.msra.mxu1 %v2312_v18 }
 0x151   :  { %2182 = vmatprep.subr.bf16.mxu1 %v2227_v0  ;;  %v1538_v47 = vadd.f32 -1.0, %v1288_v46 }
 0x152   :  { %2196 = vmatpush3.bf16.msra.mxu0 %v2329_v24 }
 0x153   :  { %2197 = vmatprep.subr.bf16.mxu0 %v2227_v0  ;;  %v1290_v48 = vsel %vm1202_vm14, %v1538_v47, %v1288_v46 }
 0x154   :  { %2184 = vmatpush3.bf16.msra.mxu1 %v2329_v24  ;;  %v1376_v49 = vmul.f32 0.9, %v1290_v48  ;;  %vm1291_vm15 = vcmp.gt.f32.partialorder %v1290_v48, 1.0 }
 0x155   :  { %2185 = vmatprep.subr.bf16.mxu1 %v2227_v0 }
 0x156   :  { %2199 = vmatpush3.bf16.msra.mxu0 %v2374_v38  ;;  %v1377_v52 = vadd.f32 %v1376_v49, %v2383_v41 }
 0x157   :  { %2212 = vmatprep.subr.bf16.mxu0 %v2227_v0 }
 0x158   :  { %2187 = vmatpush3.bf16.msra.mxu1 %v2374_v38  ;;  %v1543_v53 = vadd.f32 -1.0, %v1377_v52 }
 0x159   :  { %1980 = vmatmul.mubr.msk.f32.vlgmr.msra.gmra.mrb[12].mxu0 %vm137_vm1, %v1203_v50  ;;  %2200 = vmatprep.subr.bf16.mxu1 %v2227_v0 }
 0x15a   :  { %2214 = vmatpush3.bf16.msra.mxu0 %v2302_v15  ;;  %2017 = vmatprep.mubr.msk.f32.mxu0 %vm2228_vm0, %v2229_v4  ;;  %v1379_v41 = vsel %vm1291_vm15, %v1543_v53, %v1377_v52 }
 0x15b   :  { %1961 = vmatmul.mubr.msk.f32.vlgmr.msra.gmra.mrb[12].mxu1 %vm137_vm1, %v1114_v51  ;;  %2215 = vmatprep.subr.bf16.mxu0 %v2227_v0 }
 0x15c   :  { %2202 = vmatpush3.bf16.msra.mxu1 %v2302_v15  ;;  %1998 = vmatprep.mubr.msk.f32.mxu1 %vm2228_vm0, %v2229_v4  ;;  %vm1380_vm0 = vcmp.gt.f32.partialorder %v1379_v41, 1.0 }
 0x15d   :  { %2203 = vmatprep.subr.bf16.mxu1 %v2227_v0  ;;  %v1381_v15 = vsel %vm1380_vm0, 1.0, %v2229_v4 }
 0x15e   :  { %2217 = vmatpush3.bf16.msra.mxu0 %v2312_v18 }
 0x15f   :  { %2218 = vmatprep.subr.bf16.mxu0 %v2227_v0 }
 0x160   :  { %2205 = vmatpush3.bf16.msra.mxu1 %v2312_v18  ;;  %v1292_v18 = vsel %vm1291_vm15, 1.0, %v2229_v4 }
 0x161   :  { %2206 = vmatprep.subr.bf16.mxu1 %v2227_v0 }
 0x162   :  { %2220 = vmatpush3.bf16.msra.mxu0 %v2329_v24 }
 0x163   :  { %2221 = vmatprep.subr.bf16.mxu0 %v2227_v0 }
 0x164   :  { %2208 = vmatpush3.bf16.msra.mxu1 %v2329_v24 }
 0x165   :  { %2209 = vmatprep.subr.bf16.mxu1 %v2227_v0 }
 0x166   :  { %2223 = vmatpush3.bf16.msra.mxu0 %v2374_v38 }
 0x168   :  { %2211 = vmatpush3.bf16.msra.mxu1 %v2374_v38 }
 0x169   :  { %2018 = vmatmul.mubr.msk.f32.vlgmr.msra.gmra.mrb[14].mxu0 %vm137_vm1, %v1381_v15 }
 0x16b   :  { %1999 = vmatmul.mubr.msk.f32.vlgmr.msra.gmra.mrb[14].mxu1 %vm137_vm1, %v1292_v18 }
 0x1ce   :  { %v207_v24 = vpop.f32.mrb[0].mxu1 }
 0x1cf   :  { %v208_v0 = vadd.f32 %v2570_v54, %v207_v24  ;;  %v1753_v55 = vpop.f32.mrb[1].mxu1 }
 0x1d1   :  { %vm214_vm3 = vcmp.gt.f32.partialorder %v208_v0, 1.0  ;;  %218 = vst.msk [vmem:[%s2727_s6] sm:$0xff] %vm216_vm2, %v208_v0  ;;  %v298_v60 = vmul.f32 0.9, %v208_v0 }
 0x1d2   :  { %v215_v38 = vsel %vm214_vm3, 1.0, %v2229_v4 }
 0x1d3   :  { %217 = vst.msk [vmem:[%s2728_s5] sm:$0xff] %vm216_vm2, %v215_v38 }
 0x1dc   :  { %v383_v56 = vpop.f32.mrb[2].mxu0 }
 0x1dd   :  { %v1791_v57 = vpop.f32.mrb[3].mxu0  ;;  %v384_v2 = vadd.f32 %v2570_v54, %v383_v56 }
 0x1de   :  { %v294_v58 = vpop.f32.mrb[2].mxu1 }
 0x1df   :  { %v295_v59 = vadd.f32 %v2570_v54, %v294_v58  ;;  %v1772_v61 = vpop.f32.mrb[3].mxu1 }
 0x1e1   :  { %v299_v62 = vadd.f32 %v298_v60, %v295_v59 }
 0x1e3   :  { %v1480_v63 = vadd.f32 -1.0, %v299_v62 }
 0x1e5   :  { %v301_v1 = vsel %vm214_vm3, %v1480_v63, %v299_v62 }
 0x1e6   :  { %1482 = vst.msk [vmem:[%s2727_s6 + $0x8] sm:$0xff] %vm216_vm2, %v301_v1  ;;  %v387_v3 = vmul.f32 0.9, %v301_v1  ;;  %vm302_vm1 = vcmp.gt.f32.partialorder %v301_v1, 1.0 }
 0x1e7   :  { %v303_v5 = vsel %vm302_vm1, 1.0, %v2229_v4 }
 0x1e8   :  { %1481 = vst.msk [vmem:[%s2728_s5 + $0x8] sm:$0xff] %vm216_vm2, %v303_v5  ;;  %v388_v6 = vadd.f32 %v387_v3, %v384_v2 }
 0x1ea   :  { %v1485_v7 = vadd.f32 -1.0, %v388_v6 }
 0x1ec   :  { %v561_v8 = vpop.f32.mrb[4].mxu0  ;;  %v390_v9 = vsel %vm302_vm1, %v1485_v7, %v388_v6 }
 0x1ed   :  { %v1829_v10 = vpop.f32.mrb[5].mxu0  ;;  %vm391_vm4 = vcmp.gt.f32.partialorder %v390_v9, 1.0  ;;  %1487 = vst.msk [vmem:[%s2727_s6 + $0x10] sm:$0xff] %vm216_vm2, %v390_v9  ;;  %v476_v14 = vmul.f32 0.9, %v390_v9  ;;  %v562_v21 = vadd.f32 %v2570_v54, %v561_v8 }
 0x1ee   :  { %v392_v11 = vsel %vm391_vm4, 1.0, %v2229_v4  ;;  %v472_v12 = vpop.f32.mrb[4].mxu1 }
 0x1ef   :  { %1486 = vst.msk [vmem:[%s2728_s5 + $0x10] sm:$0xff] %vm216_vm2, %v392_v11  ;;  %v473_v13 = vadd.f32 %v2570_v54, %v472_v12  ;;  %v1810_v16 = vpop.f32.mrb[5].mxu1 }
 0x1f1   :  { %v477_v17 = vadd.f32 %v476_v14, %v473_v13 }
 0x1f3   :  { %v1490_v19 = vadd.f32 -1.0, %v477_v17 }
 0x1f5   :  { %v479_v20 = vsel %vm391_vm4, %v1490_v19, %v477_v17 }
 0x1f6   :  { %1492 = vst.msk [vmem:[%s2727_s6 + $0x18] sm:$0xff] %vm216_vm2, %v479_v20  ;;  %v565_v22 = vmul.f32 0.9, %v479_v20  ;;  %vm480_vm5 = vcmp.gt.f32.partialorder %v479_v20, 1.0 }
 0x1f7   :  { %v481_v23 = vsel %vm480_vm5, 1.0, %v2229_v4 }
 0x1f8   :  { %1491 = vst.msk [vmem:[%s2728_s5 + $0x18] sm:$0xff] %vm216_vm2, %v481_v23  ;;  %v566_v25 = vadd.f32 %v565_v22, %v562_v21 }
 0x1fa   :  { %v1495_v26 = vadd.f32 -1.0, %v566_v25 }
 0x1fc   :  { %v739_v27 = vpop.f32.mrb[6].mxu0  ;;  %v568_v28 = vsel %vm480_vm5, %v1495_v26, %v566_v25 }
 0x1fd   :  { %v1867_v29 = vpop.f32.mrb[7].mxu0  ;;  %vm569_vm6 = vcmp.gt.f32.partialorder %v568_v28, 1.0  ;;  %1497 = vst.msk [vmem:[%s2727_s6 + $0x20] sm:$0xff] %vm216_vm2, %v568_v28  ;;  %v654_v33 = vmul.f32 0.9, %v568_v28  ;;  %v740_v39 = vadd.f32 %v2570_v54, %v739_v27 }
 0x1fe   :  { %v570_v30 = vsel %vm569_vm6, 1.0, %v2229_v4  ;;  %v650_v31 = vpop.f32.mrb[6].mxu1 }
 0x1ff   :  { %1496 = vst.msk [vmem:[%s2728_s5 + $0x20] sm:$0xff] %vm216_vm2, %v570_v30  ;;  %v651_v32 = vadd.f32 %v2570_v54, %v650_v31  ;;  %v1848_v34 = vpop.f32.mrb[7].mxu1 }
 0x201   :  { %v655_v35 = vadd.f32 %v654_v33, %v651_v32 }
 0x203   :  { %v1500_v36 = vadd.f32 -1.0, %v655_v35 }
 0x205   :  { %v657_v37 = vsel %vm569_vm6, %v1500_v36, %v655_v35 }
 0x206   :  { %1502 = vst.msk [vmem:[%s2727_s6 + $0x28] sm:$0xff] %vm216_vm2, %v657_v37  ;;  %v743_v40 = vmul.f32 0.9, %v657_v37  ;;  %vm658_vm7 = vcmp.gt.f32.partialorder %v657_v37, 1.0 }
 0x207   :  { %v659_v42 = vsel %vm658_vm7, 1.0, %v2229_v4 }
 0x208   :  { %1501 = vst.msk [vmem:[%s2728_s5 + $0x28] sm:$0xff] %vm216_vm2, %v659_v42  ;;  %v744_v43 = vadd.f32 %v743_v40, %v740_v39 }
 0x20a   :  { %v1505_v44 = vadd.f32 -1.0, %v744_v43 }
 0x20c   :  { %v917_v45 = vpop.f32.mrb[8].mxu0  ;;  %v746_v46 = vsel %vm658_vm7, %v1505_v44, %v744_v43 }
 0x20d   :  { %v1905_v47 = vpop.f32.mrb[9].mxu0  ;;  %vm747_vm8 = vcmp.gt.f32.partialorder %v746_v46, 1.0  ;;  %1507 = vst.msk [vmem:[%s2727_s6 + $0x30] sm:$0xff] %vm216_vm2, %v746_v46  ;;  %v832_v51 = vmul.f32 0.9, %v746_v46  ;;  %v918_v18 = vadd.f32 %v2570_v54, %v917_v45 }
 0x20e   :  { %v748_v48 = vsel %vm747_vm8, 1.0, %v2229_v4  ;;  %v828_v49 = vpop.f32.mrb[8].mxu1 }
 0x20f   :  { %1506 = vst.msk [vmem:[%s2728_s5 + $0x30] sm:$0xff] %vm216_vm2, %v748_v48  ;;  %v829_v50 = vadd.f32 %v2570_v54, %v828_v49  ;;  %v1886_v52 = vpop.f32.mrb[9].mxu1 }
 0x211   :  { %v833_v53 = vadd.f32 %v832_v51, %v829_v50 }
 0x213   :  { %v1510_v41 = vadd.f32 -1.0, %v833_v53 }
 0x215   :  { %v835_v15 = vsel %vm747_vm8, %v1510_v41, %v833_v53 }
 0x216   :  { %1512 = vst.msk [vmem:[%s2727_s6 + $0x38] sm:$0xff] %vm216_vm2, %v835_v15  ;;  %v921_v24 = vmul.f32 0.9, %v835_v15  ;;  %vm836_vm9 = vcmp.gt.f32.partialorder %v835_v15, 1.0 }
 0x217   :  { %v837_v0 = vsel %vm836_vm9, 1.0, %v2229_v4 }
 0x218   :  { %1511 = vst.msk [vmem:[%s2728_s5 + $0x38] sm:$0xff] %vm216_vm2, %v837_v0  ;;  %v922_v55 = vadd.f32 %v921_v24, %v918_v18 }
 0x21a   :  { %v1515_v38 = vadd.f32 -1.0, %v922_v55 }
 0x21c   :  { %v1095_v56 = vpop.f32.mrb[10].mxu0  ;;  %v924_v57 = vsel %vm836_vm9, %v1515_v38, %v922_v55 }
 0x21d   :  { %v1943_v58 = vpop.f32.mrb[11].mxu0  ;;  %vm925_vm10 = vcmp.gt.f32.partialorder %v924_v57, 1.0  ;;  %1517 = vst.msk [vmem:[%s2727_s6 + $0x40] sm:$0xff] %vm216_vm2, %v924_v57  ;;  %v1010_v62 = vmul.f32 0.9, %v924_v57  ;;  %v1096_v5 = vadd.f32 %v2570_v54, %v1095_v56 }
 0x21e   :  { %v926_v59 = vsel %vm925_vm10, 1.0, %v2229_v4  ;;  %v1006_v60 = vpop.f32.mrb[10].mxu1 }
 0x21f   :  { %1516 = vst.msk [vmem:[%s2728_s5 + $0x40] sm:$0xff] %vm216_vm2, %v926_v59  ;;  %v1007_v61 = vadd.f32 %v2570_v54, %v1006_v60  ;;  %v1924_v63 = vpop.f32.mrb[11].mxu1 }
 0x221   :  { %v1011_v1 = vadd.f32 %v1010_v62, %v1007_v61 }
 0x223   :  { %v1520_v2 = vadd.f32 -1.0, %v1011_v1 }
 0x225   :  { %v1013_v3 = vsel %vm925_vm10, %v1520_v2, %v1011_v1 }
 0x226   :  { %1522 = vst.msk [vmem:[%s2727_s6 + $0x48] sm:$0xff] %vm216_vm2, %v1013_v3  ;;  %v1099_v6 = vmul.f32 0.9, %v1013_v3  ;;  %vm1014_vm11 = vcmp.gt.f32.partialorder %v1013_v3, 1.0 }
 0x227   :  { %v1015_v7 = vsel %vm1014_vm11, 1.0, %v2229_v4 }
 0x228   :  { %1521 = vst.msk [vmem:[%s2728_s5 + $0x48] sm:$0xff] %vm216_vm2, %v1015_v7  ;;  %v1100_v8 = vadd.f32 %v1099_v6, %v1096_v5 }
 0x22a   :  { %v1525_v9 = vadd.f32 -1.0, %v1100_v8 }
 0x22c   :  { %v1273_v10 = vpop.f32.mrb[12].mxu0  ;;  %v1102_v11 = vsel %vm1014_vm11, %v1525_v9, %v1100_v8 }
 0x22d   :  { %v1981_v12 = vpop.f32.mrb[13].mxu0  ;;  %vm1103_vm12 = vcmp.gt.f32.partialorder %v1102_v11, 1.0  ;;  %1527 = vst.msk [vmem:[%s2727_s6 + $0x50] sm:$0xff] %vm216_vm2, %v1102_v11  ;;  %v1188_v17 = vmul.f32 0.9, %v1102_v11  ;;  %v1274_v23 = vadd.f32 %v2570_v54, %v1273_v10 }
 0x22e   :  { %v1104_v13 = vsel %vm1103_vm12, 1.0, %v2229_v4  ;;  %v1184_v14 = vpop.f32.mrb[12].mxu1 }
 0x22f   :  { %1526 = vst.msk [vmem:[%s2728_s5 + $0x50] sm:$0xff] %vm216_vm2, %v1104_v13  ;;  %v1185_v16 = vadd.f32 %v2570_v54, %v1184_v14  ;;  %v1962_v19 = vpop.f32.mrb[13].mxu1 }
 0x231   :  { %v1189_v20 = vadd.f32 %v1188_v17, %v1185_v16 }
 0x233   :  { %v1530_v21 = vadd.f32 -1.0, %v1189_v20 }
 0x235   :  { %v1191_v22 = vsel %vm1103_vm12, %v1530_v21, %v1189_v20 }
 0x236   :  { %1532 = vst.msk [vmem:[%s2727_s6 + $0x58] sm:$0xff] %vm216_vm2, %v1191_v22  ;;  %v1277_v25 = vmul.f32 0.9, %v1191_v22  ;;  %vm1192_vm13 = vcmp.gt.f32.partialorder %v1191_v22, 1.0 }
 0x237   :  { %v1193_v26 = vsel %vm1192_vm13, 1.0, %v2229_v4 }
 0x238   :  { %1531 = vst.msk [vmem:[%s2728_s5 + $0x58] sm:$0xff] %vm216_vm2, %v1193_v26  ;;  %v1278_v27 = vadd.f32 %v1277_v25, %v1274_v23 }
 0x23a   :  { %v1535_v28 = vadd.f32 -1.0, %v1278_v27 }
 0x23c   :  { %v1451_v29 = vpop.f32.mrb[14].mxu0  ;;  %v1280_v30 = vsel %vm1192_vm13, %v1535_v28, %v1278_v27 }
 0x23d   :  { %v2019_v31 = vpop.f32.mrb[15].mxu0  ;;  %vm1281_vm14 = vcmp.gt.f32.partialorder %v1280_v30, 1.0  ;;  %1537 = vst.msk [vmem:[%s2727_s6 + $0x60] sm:$0xff] %vm216_vm2, %v1280_v30  ;;  %v1366_v35 = vmul.f32 0.9, %v1280_v30  ;;  %v1452_v42 = vadd.f32 %v2570_v54, %v1451_v29 }
 0x23e   :  { %v1282_v32 = vsel %vm1281_vm14, 1.0, %v2229_v4  ;;  %v1362_v33 = vpop.f32.mrb[14].mxu1 }
 0x23f   :  { %1536 = vst.msk [vmem:[%s2728_s5 + $0x60] sm:$0xff] %vm216_vm2, %v1282_v32  ;;  %v1363_v34 = vadd.f32 %v2570_v54, %v1362_v33  ;;  %v2000_v36 = vpop.f32.mrb[15].mxu1 }
 0x241   :  { %v1367_v37 = vadd.f32 %v1366_v35, %v1363_v34 }
 0x243   :  { %v1540_v39 = vadd.f32 -1.0, %v1367_v37 }
 0x245   :  { %v1369_v40 = vsel %vm1281_vm14, %v1540_v39, %v1367_v37 }
 0x246   :  { %vm1370_vm15 = vcmp.gt.f32.partialorder %v1369_v40, 1.0  ;;  %1542 = vst.msk [vmem:[%s2727_s6 + $0x68] sm:$0xff] %vm216_vm2, %v1369_v40  ;;  %v1455_v43 = vmul.f32 0.9, %v1369_v40 }
 0x247   :  { %v1371_v44 = vsel %vm1370_vm15, 1.0, %v2229_v4 }
 0x248   :  { %1541 = vst.msk [vmem:[%s2728_s5 + $0x68] sm:$0xff] %vm216_vm2, %v1371_v44  ;;  %v1456_v45 = vadd.f32 %v1455_v43, %v1452_v42 }
 0x24a   :  { %v1545_v46 = vadd.f32 -1.0, %v1456_v45 }
 0x24c   :  { %v1458_v47 = vsel %vm1370_vm15, %v1545_v46, %v1456_v45 }
 0x24d   :  { %vm1459_vm0 = vcmp.gt.f32.partialorder %v1458_v47, 1.0  ;;  %1547 = vst.msk [vmem:[%s2727_s6 + $0x70] sm:$0xff] %vm216_vm2, %v1458_v47 }
 0x24e   :  { %v1460_v54 = vsel %vm1459_vm0, 1.0, %v2229_v4 }
 0x24f   :  { %1546 = vst.msk [vmem:[%s2728_s5 + $0x70] sm:$0xff] %vm216_vm2, %v1460_v54 }

</bundles_post_ra>
